<compile_context>
chip_gen: v7x
topology: tpu7x:2x2x1
jax: 0.10.0
libtpu: 0.0.40
codegen_flags: <defaults>
</compile_context>

<pallas_src>
import functools

import jax
import jax.numpy as jnp
from jax import lax
from jax.experimental import pallas as pl
from jax.experimental.pallas import tpu as pltpu

KSIZE = 7
PAD = KSIZE // 2


def _pick_nb(n, per_sample_bytes, *, max_nb, target_block_bytes):
    """Largest batch block <= max_nb dividing n, under the HBM-tile target,
    preferring to keep >= 2 grid steps (DMA overlap / v7x dual-TC)."""
    candidates = [d for d in range(1, min(n, max_nb) + 1) if n % d == 0]
    for need_steps in (2, 1):
        ok = [d for d in candidates
              if d * per_sample_bytes <= target_block_bytes
              and (n // d) >= need_steps]
        if ok:
            return max(ok)
    return 1


def _pick_c_chunk(c, nb, hw, itemsize):
    """Channel chunk: multiple of the dtype's sublane packing, sized so the
    per-chunk f32 working set (x chunk + attn broadcast) stays ~<=48 vregs."""
    packing = max(8, 32 // max(1, itemsize))        # 8 f32 / 16 bf16 / 32 int8
    budget_bytes = 192 * 1024
    cap = budget_bytes // max(1, 2 * nb * hw * 4)
    if cap >= c:
        return c                                    # whole block fits budget
    return min(c, max(packing, (cap // packing) * packing))


def _spatial_attention_kernel(w_ref, x_ref, o_ref, *, nb, c, h, w, c_chunk):
    # w_ref: SMEM f32[2*7*7] conv weights, (in_ch, ky, kx) order, taps of
    #        channel 0 pre-scaled by 1/C (mean folded into the weights).
    # x_ref: VMEM [NB, C, H*W] block (lane-dense minor dim).
    # o_ref: VMEM [NB, C, H*W] block.
    hw = h * w
    f32 = jnp.float32
    n_full = c // c_chunk
    c_rem = c - n_full * c_chunk
    single = (n_full == 1 and c_rem == 0)

    # ---- channel reduction: sum (mean folded into weights) + running max ----
    def reduce_chunk(start, size, s, m):
        blk = x_ref[:, pl.ds(start, size), :].astype(f32)
        return s + jnp.sum(blk, axis=1), jnp.maximum(m, jnp.max(blk, axis=1))

    if single:
        blk = x_ref[...].astype(f32)                # fits the vreg budget
        sum_map = jnp.sum(blk, axis=1)              # (NB, HW)
        max_map = jnp.max(blk, axis=1)              # (NB, HW)
    else:
        init = (jnp.zeros((nb, hw), f32), jnp.full((nb, hw), -jnp.inf, f32))

        def red_body(i, carry):
            start = pl.multiple_of(i * c_chunk, c_chunk)
            return reduce_chunk(start, c_chunk, *carry)

        sum_map, max_map = lax.fori_loop(0, n_full, red_body, init,
                                         unroll=n_full <= 8)
        if c_rem > 0:                               # static one-off tail
            sum_map, max_map = reduce_chunk(n_full * c_chunk, c_rem,
                                            sum_map, max_map)

    # ---- 7x7 conv on the two reduced maps (flattened, two-stage shifts) -----
    flat = lax.broadcasted_iota(jnp.int32, (nb, hw), 1)     # flat spatial index
    col = flat % w                                          # column index

    # Edge masks hoisted out of the per-channel loop (shared by both maps).
    row_mask = {}
    col_mask = {}
    for k in range(KSIZE):
        d = k - PAD
        if d > 0:
            row_mask[k] = flat < (hw - d * w)
            col_mask[k] = col < (w - d)
        elif d < 0:
            row_mask[k] = flat >= (-d * w)
            col_mask[k] = col >= (-d)

    acc = jnp.zeros((nb, hw), f32)
    for ci, m in enumerate((sum_map, max_map)):             # ci=0: "mean", ci=1: max
        # Stage 1: row (dy) shifts, shared across all kx of this channel.
        cols = [jnp.zeros((nb, hw), f32) for _ in range(KSIZE)]
        for ky in range(KSIZE):
            dy = ky - PAD
            if dy == 0:
                r = m
            else:
                r = pltpu.roll(m, shift=(-dy * w) % hw, axis=1)
                r = jnp.where(row_mask[ky], r, 0.0)
            base = ci * KSIZE * KSIZE + ky * KSIZE
            wk = [w_ref[base + kx] for kx in range(KSIZE)]  # lazy SMEM reads
            for kx in range(KSIZE):
                cols[kx] = cols[kx] + wk[kx] * r
        # Stage 2: column (dx) shifts of the per-kx accumulators.
        for kx in range(KSIZE):
            dx = kx - PAD
            if dx == 0:
                acc = acc + cols[kx]
            else:
                s = pltpu.roll(cols[kx], shift=(-dx) % hw, axis=1)
                acc = acc + jnp.where(col_mask[kx], s, 0.0)

    attn = jax.nn.sigmoid(acc)                              # (NB, HW), EUP
    attn_x = attn.astype(x_ref.dtype)                       # native-dtype multiply

    # ---- out = x * attn, streamed over C, lane-dense stores ------------------
    if single:
        attn_b = jnp.broadcast_to(attn_x[:, None, :], (nb, c, hw))
        o_ref[...] = (x_ref[...] * attn_b).astype(o_ref.dtype)
    else:
        # Hoist the broadcast out of the loop (JAX does not CSE broadcast_in_dim).
        attn_b = jnp.broadcast_to(attn_x[:, None, :], (nb, c_chunk, hw))

        def mul_body(i, carry):
            start = pl.multiple_of(i * c_chunk, c_chunk)
            o_ref[:, pl.ds(start, c_chunk), :] = (
                x_ref[:, pl.ds(start, c_chunk), :] * attn_b).astype(o_ref.dtype)
            return carry

        lax.fori_loop(0, n_full, mul_body, 0, unroll=n_full <= 8)
        if c_rem > 0:                               # static one-off tail
            start = n_full * c_chunk
            attn_t = jnp.broadcast_to(attn_x[:, None, :], (nb, c_rem, hw))
            o_ref[:, pl.ds(start, c_rem), :] = (
                x_ref[:, pl.ds(start, c_rem), :] * attn_t).astype(o_ref.dtype)


def spatial_attention(x, conv_weight, *, max_batch_block=8,
                      target_block_bytes=4 << 20):
    """x: (N, C, H, W). conv_weight: (1, 2, 7, 7) float (PyTorch OIHW, no bias)."""
    n, c, h, w = x.shape
    hw = h * w
    itemsize = x.dtype.itemsize

    # Fold the 1/C of the channel mean into the first 49 conv taps.
    w2 = conv_weight.astype(jnp.float32).reshape(2, KSIZE, KSIZE)
    w2 = w2.at[0].multiply(1.0 / c)
    w_flat = w2.reshape(-1)                                 # (98,)

    per_sample_bytes = c * hw * itemsize
    nb = _pick_nb(n, per_sample_bytes, max_nb=max_batch_block,
                  target_block_bytes=target_block_bytes)
    c_chunk = _pick_c_chunk(c, nb, hw, itemsize)

    # Lane-dense view: minor dim H*W.
    x2 = x.reshape(n, c, hw)

    # VMEM budget: double-buffered in + out blocks, ~20 (nb, hw) f32 conv
    # temporaries, one streamed chunk working set, plus slack.  Capped at
    # 48 MiB (v7x has 64 MiB per TensorCore).
    blk_bytes = nb * per_sample_bytes
    temp_bytes = 20 * nb * hw * 4 + 2 * nb * c_chunk * hw * 4
    vmem_limit = int(min(max(4 * blk_bytes + temp_bytes + (2 << 20), 32 << 20),
                         48 << 20))
    # TODO(synk): samples whose full (C, H*W) block cannot fit VMEM need an
    # extra C/H-tiled grid axis (two-pass reduce-then-multiply); not needed here.

    kernel = functools.partial(
        _spatial_attention_kernel, nb=nb, c=c, h=h, w=w, c_chunk=c_chunk)

    cost = pl.CostEstimate(
        flops=int(3 * n * c * hw + 4 * KSIZE * KSIZE * n * hw),
        transcendentals=int(n * hw),
        bytes_accessed=int(2 * n * c * hw * itemsize),
    )

    out2 = pl.pallas_call(
        kernel,
        out_shape=jax.ShapeDtypeStruct((n, c, hw), x.dtype),
        grid_spec=pltpu.PrefetchScalarGridSpec(
            num_scalar_prefetch=0,
            grid=(n // nb,),
            in_specs=[
                pl.BlockSpec(memory_space=pltpu.MemorySpace.SMEM),   # 98 weights
                pl.BlockSpec((nb, c, hw), lambda i: (i, 0, 0)),
            ],
            out_specs=pl.BlockSpec((nb, c, hw), lambda i: (i, 0, 0)),
        ),
        compiler_params=pltpu.CompilerParams(
            dimension_semantics=("parallel",),
            vmem_limit_bytes=vmem_limit,
        ),
        cost_estimate=cost,
    )(w_flat, x2)

    return out2.reshape(n, c, h, w)


def spatial_attention_ref(x, conv_weight):
    """Pure-JAX reference mirroring the PyTorch module."""
    avg = jnp.mean(x, axis=1, keepdims=True)
    mx = jnp.max(x, axis=1, keepdims=True)
    cat = jnp.concatenate([avg, mx], axis=1)                # (N, 2, H, W)
    conv = jax.lax.conv_general_dilated(
        cat, conv_weight,
        window_strides=(1, 1),
        padding=((PAD, PAD), (PAD, PAD)),
        dimension_numbers=("NCHW", "OIHW", "NCHW"),
    )                                                       # (N, 1, H, W)
    return x * jax.nn.sigmoid(conv)


if __name__ == "__main__":
    key = jax.random.PRNGKey(0)
    kx_, kw_ = jax.random.split(key)

    N, C, H, W = 2, 4, 16, 16
    x = jax.random.normal(kx_, (N, C, H, W), dtype=jnp.float32)

    # Deterministic synthetic conv weight (shape matches nn.Conv2d(2, 1, 7, bias=False)).
    conv_weight = jax.random.normal(kw_, (1, 2, KSIZE, KSIZE), dtype=jnp.float32) * 0.1

    out = spatial_attention(x, conv_weight)
    out = jax.block_until_ready(out)

    ref = spatial_attention_ref(x, conv_weight)
    assert out.shape == (N, C, H, W)
    assert jnp.allclose(out, ref, rtol=1e-4, atol=1e-5), "mismatch vs reference"

    print("KERNEL_OK")
</pallas_src>

<mosaic_0001>
module attributes {stable_mosaic.version = 11 : i64} {
  func.func @_spatial_attention_kernel(%arg0: i32, %arg1: memref<98xf32, #tpu.memory_space<smem>>, %arg2: memref<1x4x256xf32, #tpu.memory_space<vmem>>, %arg3: memref<1x4x256xf32, #tpu.memory_space<vmem>>) attributes {dimension_semantics = [#tpu.dimension_semantics<parallel>], iteration_bounds = array<i64: 2>, scalar_prefetch = 0 : i64, scratch_operands = 0 : i64, tpu.core_type = #tpu.core_type<tc>, window_params = [{transform_indices = @transform_0, window_bounds = array<i64: 98>}, {transform_indices = @transform_1, window_bounds = array<i64: 1, 4, 256>}, {transform_indices = @transform_2, window_bounds = array<i64: 1, 4, 256>}]} {
    %c0 = arith.constant 0 : index
    %c0_0 = arith.constant 0 : index
    %c0_1 = arith.constant 0 : index
    %0 = vector.load %arg2[%c0, %c0_0, %c0_1] : memref<1x4x256xf32, #tpu.memory_space<vmem>>, vector<1x4x256xf32>
    %cst = arith.constant dense<0.000000e+00> : vector<1x256xf32>
    %1 = vector.multi_reduction <add>, %0, %cst [1] : vector<1x4x256xf32> to vector<1x256xf32>
    %cst_2 = arith.constant dense<0xFF800000> : vector<1x256xf32>
    %2 = vector.multi_reduction <maximumf>, %0, %cst_2 [1] : vector<1x4x256xf32> to vector<1x256xf32>
    %3 = tpu.iota {dimensions = array<i32: 1>} : vector<1x256xi32>
    %c16_i32 = arith.constant 16 : i32
    %c0_i32 = arith.constant 0 : i32
    %4 = arith.cmpi eq, %c16_i32, %c0_i32 : i32
    %c1_i32 = arith.constant 1 : i32
    %5 = arith.select %4, %c1_i32, %c16_i32 : i32
    %6 = vector.broadcast %5 : i32 to vector<1x256xi32>
    %7 = arith.remsi %3, %6 : vector<1x256xi32>
    %c0_i32_3 = arith.constant 0 : i32
    %8 = vector.broadcast %c0_i32_3 : i32 to vector<1x256xi32>
    %9 = arith.cmpi ne, %7, %8 : vector<1x256xi32>
    %c0_i32_4 = arith.constant 0 : i32
    %10 = vector.broadcast %c0_i32_4 : i32 to vector<1x256xi32>
    %11 = arith.cmpi slt, %7, %10 : vector<1x256xi32>
    %c0_i32_5 = arith.constant 0 : i32
    %12 = arith.cmpi slt, %5, %c0_i32_5 : i32
    %13 = vector.broadcast %12 : i1 to vector<1x256xi1>
    %14 = vector.broadcast %13 : vector<1x256xi1> to vector<1x256xi1>
    %15 = arith.xori %11, %14 : vector<1x256xi1>
    %16 = arith.andi %15, %9 : vector<1x256xi1>
    %17 = vector.broadcast %5 : i32 to vector<1x256xi32>
    %18 = arith.addi %7, %17 : vector<1x256xi32>
    %19 = arith.select %16, %18, %7 : vector<1x256xi1>, vector<1x256xi32>
    %c48_i32 = arith.constant 48 : i32
    %20 = vector.broadcast %c48_i32 : i32 to vector<1x256xi32>
    %21 = arith.cmpi sge, %3, %20 : vector<1x256xi32>
    %c3_i32 = arith.constant 3 : i32
    %22 = vector.broadcast %c3_i32 : i32 to vector<1x256xi32>
    %23 = arith.cmpi sge, %19, %22 : vector<1x256xi32>
    %c32_i32 = arith.constant 32 : i32
    %24 = vector.broadcast %c32_i32 : i32 to vector<1x256xi32>
    %25 = arith.cmpi sge, %3, %24 : vector<1x256xi32>
    %c2_i32 = arith.constant 2 : i32
    %26 = vector.broadcast %c2_i32 : i32 to vector<1x256xi32>
    %27 = arith.cmpi sge, %19, %26 : vector<1x256xi32>
    %c16_i32_6 = arith.constant 16 : i32
    %28 = vector.broadcast %c16_i32_6 : i32 to vector<1x256xi32>
    %29 = arith.cmpi sge, %3, %28 : vector<1x256xi32>
    %c1_i32_7 = arith.constant 1 : i32
    %30 = vector.broadcast %c1_i32_7 : i32 to vector<1x256xi32>
    %31 = arith.cmpi sge, %19, %30 : vector<1x256xi32>
    %c240_i32 = arith.constant 240 : i32
    %32 = vector.broadcast %c240_i32 : i32 to vector<1x256xi32>
    %33 = arith.cmpi slt, %3, %32 : vector<1x256xi32>
    %c15_i32 = arith.constant 15 : i32
    %34 = vector.broadcast %c15_i32 : i32 to vector<1x256xi32>
    %35 = arith.cmpi slt, %19, %34 : vector<1x256xi32>
    %c224_i32 = arith.constant 224 : i32
    %36 = vector.broadcast %c224_i32 : i32 to vector<1x256xi32>
    %37 = arith.cmpi slt, %3, %36 : vector<1x256xi32>
    %c14_i32 = arith.constant 14 : i32
    %38 = vector.broadcast %c14_i32 : i32 to vector<1x256xi32>
    %39 = arith.cmpi slt, %19, %38 : vector<1x256xi32>
    %c208_i32 = arith.constant 208 : i32
    %40 = vector.broadcast %c208_i32 : i32 to vector<1x256xi32>
    %41 = arith.cmpi slt, %3, %40 : vector<1x256xi32>
    %c13_i32 = arith.constant 13 : i32
    %42 = vector.broadcast %c13_i32 : i32 to vector<1x256xi32>
    %43 = arith.cmpi slt, %19, %42 : vector<1x256xi32>
    %cst_8 = arith.constant 0.000000e+00 : f32
    %44 = vector.broadcast %cst_8 : f32 to vector<1x256xf32>
    %cst_9 = arith.constant 0.000000e+00 : f32
    %45 = vector.broadcast %cst_9 : f32 to vector<1x256xf32>
    %cst_10 = arith.constant 0.000000e+00 : f32
    %46 = vector.broadcast %cst_10 : f32 to vector<1x256xf32>
    %cst_11 = arith.constant 0.000000e+00 : f32
    %47 = vector.broadcast %cst_11 : f32 to vector<1x256xf32>
    %cst_12 = arith.constant 0.000000e+00 : f32
    %48 = vector.broadcast %cst_12 : f32 to vector<1x256xf32>
    %cst_13 = arith.constant 0.000000e+00 : f32
    %49 = vector.broadcast %cst_13 : f32 to vector<1x256xf32>
    %cst_14 = arith.constant 0.000000e+00 : f32
    %50 = vector.broadcast %cst_14 : f32 to vector<1x256xf32>
    %cst_15 = arith.constant 0.000000e+00 : f32
    %51 = vector.broadcast %cst_15 : f32 to vector<1x256xf32>
    %c48_i32_16 = arith.constant 48 : i32
    %52 = tpu.dynamic_rotate %1 by %c48_i32_16 dim 1 : vector<1x256xf32>, i32 -> vector<1x256xf32>
    %cst_17 = arith.constant 0.000000e+00 : f32
    %53 = vector.broadcast %cst_17 : f32 to vector<1x256xf32>
    %54 = arith.select %21, %52, %53 : vector<1x256xi1>, vector<1x256xf32>
    %c0_18 = arith.constant 0 : index
    %55 = memref.load %arg1[%c0_18] : memref<98xf32, #tpu.memory_space<smem>>
    %c1 = arith.constant 1 : index
    %56 = memref.load %arg1[%c1] : memref<98xf32, #tpu.memory_space<smem>>
    %c2 = arith.constant 2 : index
    %57 = memref.load %arg1[%c2] : memref<98xf32, #tpu.memory_space<smem>>
    %c3 = arith.constant 3 : index
    %58 = memref.load %arg1[%c3] : memref<98xf32, #tpu.memory_space<smem>>
    %c4 = arith.constant 4 : index
    %59 = memref.load %arg1[%c4] : memref<98xf32, #tpu.memory_space<smem>>
    %c5 = arith.constant 5 : index
    %60 = memref.load %arg1[%c5] : memref<98xf32, #tpu.memory_space<smem>>
    %c6 = arith.constant 6 : index
    %61 = memref.load %arg1[%c6] : memref<98xf32, #tpu.memory_space<smem>>
    %62 = vector.broadcast %55 : f32 to vector<1x256xf32>
    %63 = arith.mulf %62, %54 : vector<1x256xf32>
    %64 = arith.addf %45, %63 : vector<1x256xf32>
    %65 = vector.broadcast %56 : f32 to vector<1x256xf32>
    %66 = arith.mulf %65, %54 : vector<1x256xf32>
    %67 = arith.addf %46, %66 : vector<1x256xf32>
    %68 = vector.broadcast %57 : f32 to vector<1x256xf32>
    %69 = arith.mulf %68, %54 : vector<1x256xf32>
    %70 = arith.addf %47, %69 : vector<1x256xf32>
    %71 = vector.broadcast %58 : f32 to vector<1x256xf32>
    %72 = arith.mulf %71, %54 : vector<1x256xf32>
    %73 = arith.addf %48, %72 : vector<1x256xf32>
    %74 = vector.broadcast %59 : f32 to vector<1x256xf32>
    %75 = arith.mulf %74, %54 : vector<1x256xf32>
    %76 = arith.addf %49, %75 : vector<1x256xf32>
    %77 = vector.broadcast %60 : f32 to vector<1x256xf32>
    %78 = arith.mulf %77, %54 : vector<1x256xf32>
    %79 = arith.addf %50, %78 : vector<1x256xf32>
    %80 = vector.broadcast %61 : f32 to vector<1x256xf32>
    %81 = arith.mulf %80, %54 : vector<1x256xf32>
    %82 = arith.addf %51, %81 : vector<1x256xf32>
    %c32_i32_19 = arith.constant 32 : i32
    %83 = tpu.dynamic_rotate %1 by %c32_i32_19 dim 1 : vector<1x256xf32>, i32 -> vector<1x256xf32>
    %cst_20 = arith.constant 0.000000e+00 : f32
    %84 = vector.broadcast %cst_20 : f32 to vector<1x256xf32>
    %85 = arith.select %25, %83, %84 : vector<1x256xi1>, vector<1x256xf32>
    %c7 = arith.constant 7 : index
    %86 = memref.load %arg1[%c7] : memref<98xf32, #tpu.memory_space<smem>>
    %c8 = arith.constant 8 : index
    %87 = memref.load %arg1[%c8] : memref<98xf32, #tpu.memory_space<smem>>
    %c9 = arith.constant 9 : index
    %88 = memref.load %arg1[%c9] : memref<98xf32, #tpu.memory_space<smem>>
    %c10 = arith.constant 10 : index
    %89 = memref.load %arg1[%c10] : memref<98xf32, #tpu.memory_space<smem>>
    %c11 = arith.constant 11 : index
    %90 = memref.load %arg1[%c11] : memref<98xf32, #tpu.memory_space<smem>>
    %c12 = arith.constant 12 : index
    %91 = memref.load %arg1[%c12] : memref<98xf32, #tpu.memory_space<smem>>
    %c13 = arith.constant 13 : index
    %92 = memref.load %arg1[%c13] : memref<98xf32, #tpu.memory_space<smem>>
    %93 = vector.broadcast %86 : f32 to vector<1x256xf32>
    %94 = arith.mulf %93, %85 : vector<1x256xf32>
    %95 = arith.addf %64, %94 : vector<1x256xf32>
    %96 = vector.broadcast %87 : f32 to vector<1x256xf32>
    %97 = arith.mulf %96, %85 : vector<1x256xf32>
    %98 = arith.addf %67, %97 : vector<1x256xf32>
    %99 = vector.broadcast %88 : f32 to vector<1x256xf32>
    %100 = arith.mulf %99, %85 : vector<1x256xf32>
    %101 = arith.addf %70, %100 : vector<1x256xf32>
    %102 = vector.broadcast %89 : f32 to vector<1x256xf32>
    %103 = arith.mulf %102, %85 : vector<1x256xf32>
    %104 = arith.addf %73, %103 : vector<1x256xf32>
    %105 = vector.broadcast %90 : f32 to vector<1x256xf32>
    %106 = arith.mulf %105, %85 : vector<1x256xf32>
    %107 = arith.addf %76, %106 : vector<1x256xf32>
    %108 = vector.broadcast %91 : f32 to vector<1x256xf32>
    %109 = arith.mulf %108, %85 : vector<1x256xf32>
    %110 = arith.addf %79, %109 : vector<1x256xf32>
    %111 = vector.broadcast %92 : f32 to vector<1x256xf32>
    %112 = arith.mulf %111, %85 : vector<1x256xf32>
    %113 = arith.addf %82, %112 : vector<1x256xf32>
    %c16_i32_21 = arith.constant 16 : i32
    %114 = tpu.dynamic_rotate %1 by %c16_i32_21 dim 1 : vector<1x256xf32>, i32 -> vector<1x256xf32>
    %cst_22 = arith.constant 0.000000e+00 : f32
    %115 = vector.broadcast %cst_22 : f32 to vector<1x256xf32>
    %116 = arith.select %29, %114, %115 : vector<1x256xi1>, vector<1x256xf32>
    %c14 = arith.constant 14 : index
    %117 = memref.load %arg1[%c14] : memref<98xf32, #tpu.memory_space<smem>>
    %c15 = arith.constant 15 : index
    %118 = memref.load %arg1[%c15] : memref<98xf32, #tpu.memory_space<smem>>
    %c16 = arith.constant 16 : index
    %119 = memref.load %arg1[%c16] : memref<98xf32, #tpu.memory_space<smem>>
    %c17 = arith.constant 17 : index
    %120 = memref.load %arg1[%c17] : memref<98xf32, #tpu.memory_space<smem>>
    %c18 = arith.constant 18 : index
    %121 = memref.load %arg1[%c18] : memref<98xf32, #tpu.memory_space<smem>>
    %c19 = arith.constant 19 : index
    %122 = memref.load %arg1[%c19] : memref<98xf32, #tpu.memory_space<smem>>
    %c20 = arith.constant 20 : index
    %123 = memref.load %arg1[%c20] : memref<98xf32, #tpu.memory_space<smem>>
    %124 = vector.broadcast %117 : f32 to vector<1x256xf32>
    %125 = arith.mulf %124, %116 : vector<1x256xf32>
    %126 = arith.addf %95, %125 : vector<1x256xf32>
    %127 = vector.broadcast %118 : f32 to vector<1x256xf32>
    %128 = arith.mulf %127, %116 : vector<1x256xf32>
    %129 = arith.addf %98, %128 : vector<1x256xf32>
    %130 = vector.broadcast %119 : f32 to vector<1x256xf32>
    %131 = arith.mulf %130, %116 : vector<1x256xf32>
    %132 = arith.addf %101, %131 : vector<1x256xf32>
    %133 = vector.broadcast %120 : f32 to vector<1x256xf32>
    %134 = arith.mulf %133, %116 : vector<1x256xf32>
    %135 = arith.addf %104, %134 : vector<1x256xf32>
    %136 = vector.broadcast %121 : f32 to vector<1x256xf32>
    %137 = arith.mulf %136, %116 : vector<1x256xf32>
    %138 = arith.addf %107, %137 : vector<1x256xf32>
    %139 = vector.broadcast %122 : f32 to vector<1x256xf32>
    %140 = arith.mulf %139, %116 : vector<1x256xf32>
    %141 = arith.addf %110, %140 : vector<1x256xf32>
    %142 = vector.broadcast %123 : f32 to vector<1x256xf32>
    %143 = arith.mulf %142, %116 : vector<1x256xf32>
    %144 = arith.addf %113, %143 : vector<1x256xf32>
    %c21 = arith.constant 21 : index
    %145 = memref.load %arg1[%c21] : memref<98xf32, #tpu.memory_space<smem>>
    %c22 = arith.constant 22 : index
    %146 = memref.load %arg1[%c22] : memref<98xf32, #tpu.memory_space<smem>>
    %c23 = arith.constant 23 : index
    %147 = memref.load %arg1[%c23] : memref<98xf32, #tpu.memory_space<smem>>
    %c24 = arith.constant 24 : index
    %148 = memref.load %arg1[%c24] : memref<98xf32, #tpu.memory_space<smem>>
    %c25 = arith.constant 25 : index
    %149 = memref.load %arg1[%c25] : memref<98xf32, #tpu.memory_space<smem>>
    %c26 = arith.constant 26 : index
    %150 = memref.load %arg1[%c26] : memref<98xf32, #tpu.memory_space<smem>>
    %c27 = arith.constant 27 : index
    %151 = memref.load %arg1[%c27] : memref<98xf32, #tpu.memory_space<smem>>
    %152 = vector.broadcast %145 : f32 to vector<1x256xf32>
    %153 = arith.mulf %152, %1 : vector<1x256xf32>
    %154 = arith.addf %126, %153 : vector<1x256xf32>
    %155 = vector.broadcast %146 : f32 to vector<1x256xf32>
    %156 = arith.mulf %155, %1 : vector<1x256xf32>
    %157 = arith.addf %129, %156 : vector<1x256xf32>
    %158 = vector.broadcast %147 : f32 to vector<1x256xf32>
    %159 = arith.mulf %158, %1 : vector<1x256xf32>
    %160 = arith.addf %132, %159 : vector<1x256xf32>
    %161 = vector.broadcast %148 : f32 to vector<1x256xf32>
    %162 = arith.mulf %161, %1 : vector<1x256xf32>
    %163 = arith.addf %135, %162 : vector<1x256xf32>
    %164 = vector.broadcast %149 : f32 to vector<1x256xf32>
    %165 = arith.mulf %164, %1 : vector<1x256xf32>
    %166 = arith.addf %138, %165 : vector<1x256xf32>
    %167 = vector.broadcast %150 : f32 to vector<1x256xf32>
    %168 = arith.mulf %167, %1 : vector<1x256xf32>
    %169 = arith.addf %141, %168 : vector<1x256xf32>
    %170 = vector.broadcast %151 : f32 to vector<1x256xf32>
    %171 = arith.mulf %170, %1 : vector<1x256xf32>
    %172 = arith.addf %144, %171 : vector<1x256xf32>
    %c240_i32_23 = arith.constant 240 : i32
    %173 = tpu.dynamic_rotate %1 by %c240_i32_23 dim 1 : vector<1x256xf32>, i32 -> vector<1x256xf32>
    %cst_24 = arith.constant 0.000000e+00 : f32
    %174 = vector.broadcast %cst_24 : f32 to vector<1x256xf32>
    %175 = arith.select %33, %173, %174 : vector<1x256xi1>, vector<1x256xf32>
    %c28 = arith.constant 28 : index
    %176 = memref.load %arg1[%c28] : memref<98xf32, #tpu.memory_space<smem>>
    %c29 = arith.constant 29 : index
    %177 = memref.load %arg1[%c29] : memref<98xf32, #tpu.memory_space<smem>>
    %c30 = arith.constant 30 : index
    %178 = memref.load %arg1[%c30] : memref<98xf32, #tpu.memory_space<smem>>
    %c31 = arith.constant 31 : index
    %179 = memref.load %arg1[%c31] : memref<98xf32, #tpu.memory_space<smem>>
    %c32 = arith.constant 32 : index
    %180 = memref.load %arg1[%c32] : memref<98xf32, #tpu.memory_space<smem>>
    %c33 = arith.constant 33 : index
    %181 = memref.load %arg1[%c33] : memref<98xf32, #tpu.memory_space<smem>>
    %c34 = arith.constant 34 : index
    %182 = memref.load %arg1[%c34] : memref<98xf32, #tpu.memory_space<smem>>
    %183 = vector.broadcast %176 : f32 to vector<1x256xf32>
    %184 = arith.mulf %183, %175 : vector<1x256xf32>
    %185 = arith.addf %154, %184 : vector<1x256xf32>
    %186 = vector.broadcast %177 : f32 to vector<1x256xf32>
    %187 = arith.mulf %186, %175 : vector<1x256xf32>
    %188 = arith.addf %157, %187 : vector<1x256xf32>
    %189 = vector.broadcast %178 : f32 to vector<1x256xf32>
    %190 = arith.mulf %189, %175 : vector<1x256xf32>
    %191 = arith.addf %160, %190 : vector<1x256xf32>
    %192 = vector.broadcast %179 : f32 to vector<1x256xf32>
    %193 = arith.mulf %192, %175 : vector<1x256xf32>
    %194 = arith.addf %163, %193 : vector<1x256xf32>
    %195 = vector.broadcast %180 : f32 to vector<1x256xf32>
    %196 = arith.mulf %195, %175 : vector<1x256xf32>
    %197 = arith.addf %166, %196 : vector<1x256xf32>
    %198 = vector.broadcast %181 : f32 to vector<1x256xf32>
    %199 = arith.mulf %198, %175 : vector<1x256xf32>
    %200 = arith.addf %169, %199 : vector<1x256xf32>
    %201 = vector.broadcast %182 : f32 to vector<1x256xf32>
    %202 = arith.mulf %201, %175 : vector<1x256xf32>
    %203 = arith.addf %172, %202 : vector<1x256xf32>
    %c224_i32_25 = arith.constant 224 : i32
    %204 = tpu.dynamic_rotate %1 by %c224_i32_25 dim 1 : vector<1x256xf32>, i32 -> vector<1x256xf32>
    %cst_26 = arith.constant 0.000000e+00 : f32
    %205 = vector.broadcast %cst_26 : f32 to vector<1x256xf32>
    %206 = arith.select %37, %204, %205 : vector<1x256xi1>, vector<1x256xf32>
    %c35 = arith.constant 35 : index
    %207 = memref.load %arg1[%c35] : memref<98xf32, #tpu.memory_space<smem>>
    %c36 = arith.constant 36 : index
    %208 = memref.load %arg1[%c36] : memref<98xf32, #tpu.memory_space<smem>>
    %c37 = arith.constant 37 : index
    %209 = memref.load %arg1[%c37] : memref<98xf32, #tpu.memory_space<smem>>
    %c38 = arith.constant 38 : index
    %210 = memref.load %arg1[%c38] : memref<98xf32, #tpu.memory_space<smem>>
    %c39 = arith.constant 39 : index
    %211 = memref.load %arg1[%c39] : memref<98xf32, #tpu.memory_space<smem>>
    %c40 = arith.constant 40 : index
    %212 = memref.load %arg1[%c40] : memref<98xf32, #tpu.memory_space<smem>>
    %c41 = arith.constant 41 : index
    %213 = memref.load %arg1[%c41] : memref<98xf32, #tpu.memory_space<smem>>
    %214 = vector.broadcast %207 : f32 to vector<1x256xf32>
    %215 = arith.mulf %214, %206 : vector<1x256xf32>
    %216 = arith.addf %185, %215 : vector<1x256xf32>
    %217 = vector.broadcast %208 : f32 to vector<1x256xf32>
    %218 = arith.mulf %217, %206 : vector<1x256xf32>
    %219 = arith.addf %188, %218 : vector<1x256xf32>
    %220 = vector.broadcast %209 : f32 to vector<1x256xf32>
    %221 = arith.mulf %220, %206 : vector<1x256xf32>
    %222 = arith.addf %191, %221 : vector<1x256xf32>
    %223 = vector.broadcast %210 : f32 to vector<1x256xf32>
    %224 = arith.mulf %223, %206 : vector<1x256xf32>
    %225 = arith.addf %194, %224 : vector<1x256xf32>
    %226 = vector.broadcast %211 : f32 to vector<1x256xf32>
    %227 = arith.mulf %226, %206 : vector<1x256xf32>
    %228 = arith.addf %197, %227 : vector<1x256xf32>
    %229 = vector.broadcast %212 : f32 to vector<1x256xf32>
    %230 = arith.mulf %229, %206 : vector<1x256xf32>
    %231 = arith.addf %200, %230 : vector<1x256xf32>
    %232 = vector.broadcast %213 : f32 to vector<1x256xf32>
    %233 = arith.mulf %232, %206 : vector<1x256xf32>
    %234 = arith.addf %203, %233 : vector<1x256xf32>
    %c208_i32_27 = arith.constant 208 : i32
    %235 = tpu.dynamic_rotate %1 by %c208_i32_27 dim 1 : vector<1x256xf32>, i32 -> vector<1x256xf32>
    %cst_28 = arith.constant 0.000000e+00 : f32
    %236 = vector.broadcast %cst_28 : f32 to vector<1x256xf32>
    %237 = arith.select %41, %235, %236 : vector<1x256xi1>, vector<1x256xf32>
    %c42 = arith.constant 42 : index
    %238 = memref.load %arg1[%c42] : memref<98xf32, #tpu.memory_space<smem>>
    %c43 = arith.constant 43 : index
    %239 = memref.load %arg1[%c43] : memref<98xf32, #tpu.memory_space<smem>>
    %c44 = arith.constant 44 : index
    %240 = memref.load %arg1[%c44] : memref<98xf32, #tpu.memory_space<smem>>
    %c45 = arith.constant 45 : index
    %241 = memref.load %arg1[%c45] : memref<98xf32, #tpu.memory_space<smem>>
    %c46 = arith.constant 46 : index
    %242 = memref.load %arg1[%c46] : memref<98xf32, #tpu.memory_space<smem>>
    %c47 = arith.constant 47 : index
    %243 = memref.load %arg1[%c47] : memref<98xf32, #tpu.memory_space<smem>>
    %c48 = arith.constant 48 : index
    %244 = memref.load %arg1[%c48] : memref<98xf32, #tpu.memory_space<smem>>
    %245 = vector.broadcast %238 : f32 to vector<1x256xf32>
    %246 = arith.mulf %245, %237 : vector<1x256xf32>
    %247 = arith.addf %216, %246 : vector<1x256xf32>
    %248 = vector.broadcast %239 : f32 to vector<1x256xf32>
    %249 = arith.mulf %248, %237 : vector<1x256xf32>
    %250 = arith.addf %219, %249 : vector<1x256xf32>
    %251 = vector.broadcast %240 : f32 to vector<1x256xf32>
    %252 = arith.mulf %251, %237 : vector<1x256xf32>
    %253 = arith.addf %222, %252 : vector<1x256xf32>
    %254 = vector.broadcast %241 : f32 to vector<1x256xf32>
    %255 = arith.mulf %254, %237 : vector<1x256xf32>
    %256 = arith.addf %225, %255 : vector<1x256xf32>
    %257 = vector.broadcast %242 : f32 to vector<1x256xf32>
    %258 = arith.mulf %257, %237 : vector<1x256xf32>
    %259 = arith.addf %228, %258 : vector<1x256xf32>
    %260 = vector.broadcast %243 : f32 to vector<1x256xf32>
    %261 = arith.mulf %260, %237 : vector<1x256xf32>
    %262 = arith.addf %231, %261 : vector<1x256xf32>
    %263 = vector.broadcast %244 : f32 to vector<1x256xf32>
    %264 = arith.mulf %263, %237 : vector<1x256xf32>
    %265 = arith.addf %234, %264 : vector<1x256xf32>
    %c3_i32_29 = arith.constant 3 : i32
    %266 = tpu.dynamic_rotate %247 by %c3_i32_29 dim 1 : vector<1x256xf32>, i32 -> vector<1x256xf32>
    %cst_30 = arith.constant 0.000000e+00 : f32
    %267 = vector.broadcast %cst_30 : f32 to vector<1x256xf32>
    %268 = arith.select %23, %266, %267 : vector<1x256xi1>, vector<1x256xf32>
    %269 = arith.addf %44, %268 : vector<1x256xf32>
    %c2_i32_31 = arith.constant 2 : i32
    %270 = tpu.dynamic_rotate %250 by %c2_i32_31 dim 1 : vector<1x256xf32>, i32 -> vector<1x256xf32>
    %cst_32 = arith.constant 0.000000e+00 : f32
    %271 = vector.broadcast %cst_32 : f32 to vector<1x256xf32>
    %272 = arith.select %27, %270, %271 : vector<1x256xi1>, vector<1x256xf32>
    %273 = arith.addf %269, %272 : vector<1x256xf32>
    %c1_i32_33 = arith.constant 1 : i32
    %274 = tpu.dynamic_rotate %253 by %c1_i32_33 dim 1 : vector<1x256xf32>, i32 -> vector<1x256xf32>
    %cst_34 = arith.constant 0.000000e+00 : f32
    %275 = vector.broadcast %cst_34 : f32 to vector<1x256xf32>
    %276 = arith.select %31, %274, %275 : vector<1x256xi1>, vector<1x256xf32>
    %277 = arith.addf %273, %276 : vector<1x256xf32>
    %278 = arith.addf %277, %256 : vector<1x256xf32>
    %c255_i32 = arith.constant 255 : i32
    %279 = tpu.dynamic_rotate %259 by %c255_i32 dim 1 : vector<1x256xf32>, i32 -> vector<1x256xf32>
    %cst_35 = arith.constant 0.000000e+00 : f32
    %280 = vector.broadcast %cst_35 : f32 to vector<1x256xf32>
    %281 = arith.select %35, %279, %280 : vector<1x256xi1>, vector<1x256xf32>
    %282 = arith.addf %278, %281 : vector<1x256xf32>
    %c254_i32 = arith.constant 254 : i32
    %283 = tpu.dynamic_rotate %262 by %c254_i32 dim 1 : vector<1x256xf32>, i32 -> vector<1x256xf32>
    %cst_36 = arith.constant 0.000000e+00 : f32
    %284 = vector.broadcast %cst_36 : f32 to vector<1x256xf32>
    %285 = arith.select %39, %283, %284 : vector<1x256xi1>, vector<1x256xf32>
    %286 = arith.addf %282, %285 : vector<1x256xf32>
    %c253_i32 = arith.constant 253 : i32
    %287 = tpu.dynamic_rotate %265 by %c253_i32 dim 1 : vector<1x256xf32>, i32 -> vector<1x256xf32>
    %cst_37 = arith.constant 0.000000e+00 : f32
    %288 = vector.broadcast %cst_37 : f32 to vector<1x256xf32>
    %289 = arith.select %43, %287, %288 : vector<1x256xi1>, vector<1x256xf32>
    %290 = arith.addf %286, %289 : vector<1x256xf32>
    %cst_38 = arith.constant 0.000000e+00 : f32
    %291 = vector.broadcast %cst_38 : f32 to vector<1x256xf32>
    %cst_39 = arith.constant 0.000000e+00 : f32
    %292 = vector.broadcast %cst_39 : f32 to vector<1x256xf32>
    %cst_40 = arith.constant 0.000000e+00 : f32
    %293 = vector.broadcast %cst_40 : f32 to vector<1x256xf32>
    %cst_41 = arith.constant 0.000000e+00 : f32
    %294 = vector.broadcast %cst_41 : f32 to vector<1x256xf32>
    %cst_42 = arith.constant 0.000000e+00 : f32
    %295 = vector.broadcast %cst_42 : f32 to vector<1x256xf32>
    %cst_43 = arith.constant 0.000000e+00 : f32
    %296 = vector.broadcast %cst_43 : f32 to vector<1x256xf32>
    %cst_44 = arith.constant 0.000000e+00 : f32
    %297 = vector.broadcast %cst_44 : f32 to vector<1x256xf32>
    %c48_i32_45 = arith.constant 48 : i32
    %298 = tpu.dynamic_rotate %2 by %c48_i32_45 dim 1 : vector<1x256xf32>, i32 -> vector<1x256xf32>
    %cst_46 = arith.constant 0.000000e+00 : f32
    %299 = vector.broadcast %cst_46 : f32 to vector<1x256xf32>
    %300 = arith.select %21, %298, %299 : vector<1x256xi1>, vector<1x256xf32>
    %c49 = arith.constant 49 : index
    %301 = memref.load %arg1[%c49] : memref<98xf32, #tpu.memory_space<smem>>
    %c50 = arith.constant 50 : index
    %302 = memref.load %arg1[%c50] : memref<98xf32, #tpu.memory_space<smem>>
    %c51 = arith.constant 51 : index
    %303 = memref.load %arg1[%c51] : memref<98xf32, #tpu.memory_space<smem>>
    %c52 = arith.constant 52 : index
    %304 = memref.load %arg1[%c52] : memref<98xf32, #tpu.memory_space<smem>>
    %c53 = arith.constant 53 : index
    %305 = memref.load %arg1[%c53] : memref<98xf32, #tpu.memory_space<smem>>
    %c54 = arith.constant 54 : index
    %306 = memref.load %arg1[%c54] : memref<98xf32, #tpu.memory_space<smem>>
    %c55 = arith.constant 55 : index
    %307 = memref.load %arg1[%c55] : memref<98xf32, #tpu.memory_space<smem>>
    %308 = vector.broadcast %301 : f32 to vector<1x256xf32>
    %309 = arith.mulf %308, %300 : vector<1x256xf32>
    %310 = arith.addf %291, %309 : vector<1x256xf32>
    %311 = vector.broadcast %302 : f32 to vector<1x256xf32>
    %312 = arith.mulf %311, %300 : vector<1x256xf32>
    %313 = arith.addf %292, %312 : vector<1x256xf32>
    %314 = vector.broadcast %303 : f32 to vector<1x256xf32>
    %315 = arith.mulf %314, %300 : vector<1x256xf32>
    %316 = arith.addf %293, %315 : vector<1x256xf32>
    %317 = vector.broadcast %304 : f32 to vector<1x256xf32>
    %318 = arith.mulf %317, %300 : vector<1x256xf32>
    %319 = arith.addf %294, %318 : vector<1x256xf32>
    %320 = vector.broadcast %305 : f32 to vector<1x256xf32>
    %321 = arith.mulf %320, %300 : vector<1x256xf32>
    %322 = arith.addf %295, %321 : vector<1x256xf32>
    %323 = vector.broadcast %306 : f32 to vector<1x256xf32>
    %324 = arith.mulf %323, %300 : vector<1x256xf32>
    %325 = arith.addf %296, %324 : vector<1x256xf32>
    %326 = vector.broadcast %307 : f32 to vector<1x256xf32>
    %327 = arith.mulf %326, %300 : vector<1x256xf32>
    %328 = arith.addf %297, %327 : vector<1x256xf32>
    %c32_i32_47 = arith.constant 32 : i32
    %329 = tpu.dynamic_rotate %2 by %c32_i32_47 dim 1 : vector<1x256xf32>, i32 -> vector<1x256xf32>
    %cst_48 = arith.constant 0.000000e+00 : f32
    %330 = vector.broadcast %cst_48 : f32 to vector<1x256xf32>
    %331 = arith.select %25, %329, %330 : vector<1x256xi1>, vector<1x256xf32>
    %c56 = arith.constant 56 : index
    %332 = memref.load %arg1[%c56] : memref<98xf32, #tpu.memory_space<smem>>
    %c57 = arith.constant 57 : index
    %333 = memref.load %arg1[%c57] : memref<98xf32, #tpu.memory_space<smem>>
    %c58 = arith.constant 58 : index
    %334 = memref.load %arg1[%c58] : memref<98xf32, #tpu.memory_space<smem>>
    %c59 = arith.constant 59 : index
    %335 = memref.load %arg1[%c59] : memref<98xf32, #tpu.memory_space<smem>>
    %c60 = arith.constant 60 : index
    %336 = memref.load %arg1[%c60] : memref<98xf32, #tpu.memory_space<smem>>
    %c61 = arith.constant 61 : index
    %337 = memref.load %arg1[%c61] : memref<98xf32, #tpu.memory_space<smem>>
    %c62 = arith.constant 62 : index
    %338 = memref.load %arg1[%c62] : memref<98xf32, #tpu.memory_space<smem>>
    %339 = vector.broadcast %332 : f32 to vector<1x256xf32>
    %340 = arith.mulf %339, %331 : vector<1x256xf32>
    %341 = arith.addf %310, %340 : vector<1x256xf32>
    %342 = vector.broadcast %333 : f32 to vector<1x256xf32>
    %343 = arith.mulf %342, %331 : vector<1x256xf32>
    %344 = arith.addf %313, %343 : vector<1x256xf32>
    %345 = vector.broadcast %334 : f32 to vector<1x256xf32>
    %346 = arith.mulf %345, %331 : vector<1x256xf32>
    %347 = arith.addf %316, %346 : vector<1x256xf32>
    %348 = vector.broadcast %335 : f32 to vector<1x256xf32>
    %349 = arith.mulf %348, %331 : vector<1x256xf32>
    %350 = arith.addf %319, %349 : vector<1x256xf32>
    %351 = vector.broadcast %336 : f32 to vector<1x256xf32>
    %352 = arith.mulf %351, %331 : vector<1x256xf32>
    %353 = arith.addf %322, %352 : vector<1x256xf32>
    %354 = vector.broadcast %337 : f32 to vector<1x256xf32>
    %355 = arith.mulf %354, %331 : vector<1x256xf32>
    %356 = arith.addf %325, %355 : vector<1x256xf32>
    %357 = vector.broadcast %338 : f32 to vector<1x256xf32>
    %358 = arith.mulf %357, %331 : vector<1x256xf32>
    %359 = arith.addf %328, %358 : vector<1x256xf32>
    %c16_i32_49 = arith.constant 16 : i32
    %360 = tpu.dynamic_rotate %2 by %c16_i32_49 dim 1 : vector<1x256xf32>, i32 -> vector<1x256xf32>
    %cst_50 = arith.constant 0.000000e+00 : f32
    %361 = vector.broadcast %cst_50 : f32 to vector<1x256xf32>
    %362 = arith.select %29, %360, %361 : vector<1x256xi1>, vector<1x256xf32>
    %c63 = arith.constant 63 : index
    %363 = memref.load %arg1[%c63] : memref<98xf32, #tpu.memory_space<smem>>
    %c64 = arith.constant 64 : index
    %364 = memref.load %arg1[%c64] : memref<98xf32, #tpu.memory_space<smem>>
    %c65 = arith.constant 65 : index
    %365 = memref.load %arg1[%c65] : memref<98xf32, #tpu.memory_space<smem>>
    %c66 = arith.constant 66 : index
    %366 = memref.load %arg1[%c66] : memref<98xf32, #tpu.memory_space<smem>>
    %c67 = arith.constant 67 : index
    %367 = memref.load %arg1[%c67] : memref<98xf32, #tpu.memory_space<smem>>
    %c68 = arith.constant 68 : index
    %368 = memref.load %arg1[%c68] : memref<98xf32, #tpu.memory_space<smem>>
    %c69 = arith.constant 69 : index
    %369 = memref.load %arg1[%c69] : memref<98xf32, #tpu.memory_space<smem>>
    %370 = vector.broadcast %363 : f32 to vector<1x256xf32>
    %371 = arith.mulf %370, %362 : vector<1x256xf32>
    %372 = arith.addf %341, %371 : vector<1x256xf32>
    %373 = vector.broadcast %364 : f32 to vector<1x256xf32>
    %374 = arith.mulf %373, %362 : vector<1x256xf32>
    %375 = arith.addf %344, %374 : vector<1x256xf32>
    %376 = vector.broadcast %365 : f32 to vector<1x256xf32>
    %377 = arith.mulf %376, %362 : vector<1x256xf32>
    %378 = arith.addf %347, %377 : vector<1x256xf32>
    %379 = vector.broadcast %366 : f32 to vector<1x256xf32>
    %380 = arith.mulf %379, %362 : vector<1x256xf32>
    %381 = arith.addf %350, %380 : vector<1x256xf32>
    %382 = vector.broadcast %367 : f32 to vector<1x256xf32>
    %383 = arith.mulf %382, %362 : vector<1x256xf32>
    %384 = arith.addf %353, %383 : vector<1x256xf32>
    %385 = vector.broadcast %368 : f32 to vector<1x256xf32>
    %386 = arith.mulf %385, %362 : vector<1x256xf32>
    %387 = arith.addf %356, %386 : vector<1x256xf32>
    %388 = vector.broadcast %369 : f32 to vector<1x256xf32>
    %389 = arith.mulf %388, %362 : vector<1x256xf32>
    %390 = arith.addf %359, %389 : vector<1x256xf32>
    %c70 = arith.constant 70 : index
    %391 = memref.load %arg1[%c70] : memref<98xf32, #tpu.memory_space<smem>>
    %c71 = arith.constant 71 : index
    %392 = memref.load %arg1[%c71] : memref<98xf32, #tpu.memory_space<smem>>
    %c72 = arith.constant 72 : index
    %393 = memref.load %arg1[%c72] : memref<98xf32, #tpu.memory_space<smem>>
    %c73 = arith.constant 73 : index
    %394 = memref.load %arg1[%c73] : memref<98xf32, #tpu.memory_space<smem>>
    %c74 = arith.constant 74 : index
    %395 = memref.load %arg1[%c74] : memref<98xf32, #tpu.memory_space<smem>>
    %c75 = arith.constant 75 : index
    %396 = memref.load %arg1[%c75] : memref<98xf32, #tpu.memory_space<smem>>
    %c76 = arith.constant 76 : index
    %397 = memref.load %arg1[%c76] : memref<98xf32, #tpu.memory_space<smem>>
    %398 = vector.broadcast %391 : f32 to vector<1x256xf32>
    %399 = arith.mulf %398, %2 : vector<1x256xf32>
    %400 = arith.addf %372, %399 : vector<1x256xf32>
    %401 = vector.broadcast %392 : f32 to vector<1x256xf32>
    %402 = arith.mulf %401, %2 : vector<1x256xf32>
    %403 = arith.addf %375, %402 : vector<1x256xf32>
    %404 = vector.broadcast %393 : f32 to vector<1x256xf32>
    %405 = arith.mulf %404, %2 : vector<1x256xf32>
    %406 = arith.addf %378, %405 : vector<1x256xf32>
    %407 = vector.broadcast %394 : f32 to vector<1x256xf32>
    %408 = arith.mulf %407, %2 : vector<1x256xf32>
    %409 = arith.addf %381, %408 : vector<1x256xf32>
    %410 = vector.broadcast %395 : f32 to vector<1x256xf32>
    %411 = arith.mulf %410, %2 : vector<1x256xf32>
    %412 = arith.addf %384, %411 : vector<1x256xf32>
    %413 = vector.broadcast %396 : f32 to vector<1x256xf32>
    %414 = arith.mulf %413, %2 : vector<1x256xf32>
    %415 = arith.addf %387, %414 : vector<1x256xf32>
    %416 = vector.broadcast %397 : f32 to vector<1x256xf32>
    %417 = arith.mulf %416, %2 : vector<1x256xf32>
    %418 = arith.addf %390, %417 : vector<1x256xf32>
    %c240_i32_51 = arith.constant 240 : i32
    %419 = tpu.dynamic_rotate %2 by %c240_i32_51 dim 1 : vector<1x256xf32>, i32 -> vector<1x256xf32>
    %cst_52 = arith.constant 0.000000e+00 : f32
    %420 = vector.broadcast %cst_52 : f32 to vector<1x256xf32>
    %421 = arith.select %33, %419, %420 : vector<1x256xi1>, vector<1x256xf32>
    %c77 = arith.constant 77 : index
    %422 = memref.load %arg1[%c77] : memref<98xf32, #tpu.memory_space<smem>>
    %c78 = arith.constant 78 : index
    %423 = memref.load %arg1[%c78] : memref<98xf32, #tpu.memory_space<smem>>
    %c79 = arith.constant 79 : index
    %424 = memref.load %arg1[%c79] : memref<98xf32, #tpu.memory_space<smem>>
    %c80 = arith.constant 80 : index
    %425 = memref.load %arg1[%c80] : memref<98xf32, #tpu.memory_space<smem>>
    %c81 = arith.constant 81 : index
    %426 = memref.load %arg1[%c81] : memref<98xf32, #tpu.memory_space<smem>>
    %c82 = arith.constant 82 : index
    %427 = memref.load %arg1[%c82] : memref<98xf32, #tpu.memory_space<smem>>
    %c83 = arith.constant 83 : index
    %428 = memref.load %arg1[%c83] : memref<98xf32, #tpu.memory_space<smem>>
    %429 = vector.broadcast %422 : f32 to vector<1x256xf32>
    %430 = arith.mulf %429, %421 : vector<1x256xf32>
    %431 = arith.addf %400, %430 : vector<1x256xf32>
    %432 = vector.broadcast %423 : f32 to vector<1x256xf32>
    %433 = arith.mulf %432, %421 : vector<1x256xf32>
    %434 = arith.addf %403, %433 : vector<1x256xf32>
    %435 = vector.broadcast %424 : f32 to vector<1x256xf32>
    %436 = arith.mulf %435, %421 : vector<1x256xf32>
    %437 = arith.addf %406, %436 : vector<1x256xf32>
    %438 = vector.broadcast %425 : f32 to vector<1x256xf32>
    %439 = arith.mulf %438, %421 : vector<1x256xf32>
    %440 = arith.addf %409, %439 : vector<1x256xf32>
    %441 = vector.broadcast %426 : f32 to vector<1x256xf32>
    %442 = arith.mulf %441, %421 : vector<1x256xf32>
    %443 = arith.addf %412, %442 : vector<1x256xf32>
    %444 = vector.broadcast %427 : f32 to vector<1x256xf32>
    %445 = arith.mulf %444, %421 : vector<1x256xf32>
    %446 = arith.addf %415, %445 : vector<1x256xf32>
    %447 = vector.broadcast %428 : f32 to vector<1x256xf32>
    %448 = arith.mulf %447, %421 : vector<1x256xf32>
    %449 = arith.addf %418, %448 : vector<1x256xf32>
    %c224_i32_53 = arith.constant 224 : i32
    %450 = tpu.dynamic_rotate %2 by %c224_i32_53 dim 1 : vector<1x256xf32>, i32 -> vector<1x256xf32>
    %cst_54 = arith.constant 0.000000e+00 : f32
    %451 = vector.broadcast %cst_54 : f32 to vector<1x256xf32>
    %452 = arith.select %37, %450, %451 : vector<1x256xi1>, vector<1x256xf32>
    %c84 = arith.constant 84 : index
    %453 = memref.load %arg1[%c84] : memref<98xf32, #tpu.memory_space<smem>>
    %c85 = arith.constant 85 : index
    %454 = memref.load %arg1[%c85] : memref<98xf32, #tpu.memory_space<smem>>
    %c86 = arith.constant 86 : index
    %455 = memref.load %arg1[%c86] : memref<98xf32, #tpu.memory_space<smem>>
    %c87 = arith.constant 87 : index
    %456 = memref.load %arg1[%c87] : memref<98xf32, #tpu.memory_space<smem>>
    %c88 = arith.constant 88 : index
    %457 = memref.load %arg1[%c88] : memref<98xf32, #tpu.memory_space<smem>>
    %c89 = arith.constant 89 : index
    %458 = memref.load %arg1[%c89] : memref<98xf32, #tpu.memory_space<smem>>
    %c90 = arith.constant 90 : index
    %459 = memref.load %arg1[%c90] : memref<98xf32, #tpu.memory_space<smem>>
    %460 = vector.broadcast %453 : f32 to vector<1x256xf32>
    %461 = arith.mulf %460, %452 : vector<1x256xf32>
    %462 = arith.addf %431, %461 : vector<1x256xf32>
    %463 = vector.broadcast %454 : f32 to vector<1x256xf32>
    %464 = arith.mulf %463, %452 : vector<1x256xf32>
    %465 = arith.addf %434, %464 : vector<1x256xf32>
    %466 = vector.broadcast %455 : f32 to vector<1x256xf32>
    %467 = arith.mulf %466, %452 : vector<1x256xf32>
    %468 = arith.addf %437, %467 : vector<1x256xf32>
    %469 = vector.broadcast %456 : f32 to vector<1x256xf32>
    %470 = arith.mulf %469, %452 : vector<1x256xf32>
    %471 = arith.addf %440, %470 : vector<1x256xf32>
    %472 = vector.broadcast %457 : f32 to vector<1x256xf32>
    %473 = arith.mulf %472, %452 : vector<1x256xf32>
    %474 = arith.addf %443, %473 : vector<1x256xf32>
    %475 = vector.broadcast %458 : f32 to vector<1x256xf32>
    %476 = arith.mulf %475, %452 : vector<1x256xf32>
    %477 = arith.addf %446, %476 : vector<1x256xf32>
    %478 = vector.broadcast %459 : f32 to vector<1x256xf32>
    %479 = arith.mulf %478, %452 : vector<1x256xf32>
    %480 = arith.addf %449, %479 : vector<1x256xf32>
    %c208_i32_55 = arith.constant 208 : i32
    %481 = tpu.dynamic_rotate %2 by %c208_i32_55 dim 1 : vector<1x256xf32>, i32 -> vector<1x256xf32>
    %cst_56 = arith.constant 0.000000e+00 : f32
    %482 = vector.broadcast %cst_56 : f32 to vector<1x256xf32>
    %483 = arith.select %41, %481, %482 : vector<1x256xi1>, vector<1x256xf32>
    %c91 = arith.constant 91 : index
    %484 = memref.load %arg1[%c91] : memref<98xf32, #tpu.memory_space<smem>>
    %c92 = arith.constant 92 : index
    %485 = memref.load %arg1[%c92] : memref<98xf32, #tpu.memory_space<smem>>
    %c93 = arith.constant 93 : index
    %486 = memref.load %arg1[%c93] : memref<98xf32, #tpu.memory_space<smem>>
    %c94 = arith.constant 94 : index
    %487 = memref.load %arg1[%c94] : memref<98xf32, #tpu.memory_space<smem>>
    %c95 = arith.constant 95 : index
    %488 = memref.load %arg1[%c95] : memref<98xf32, #tpu.memory_space<smem>>
    %c96 = arith.constant 96 : index
    %489 = memref.load %arg1[%c96] : memref<98xf32, #tpu.memory_space<smem>>
    %c97 = arith.constant 97 : index
    %490 = memref.load %arg1[%c97] : memref<98xf32, #tpu.memory_space<smem>>
    %491 = vector.broadcast %484 : f32 to vector<1x256xf32>
    %492 = arith.mulf %491, %483 : vector<1x256xf32>
    %493 = arith.addf %462, %492 : vector<1x256xf32>
    %494 = vector.broadcast %485 : f32 to vector<1x256xf32>
    %495 = arith.mulf %494, %483 : vector<1x256xf32>
    %496 = arith.addf %465, %495 : vector<1x256xf32>
    %497 = vector.broadcast %486 : f32 to vector<1x256xf32>
    %498 = arith.mulf %497, %483 : vector<1x256xf32>
    %499 = arith.addf %468, %498 : vector<1x256xf32>
    %500 = vector.broadcast %487 : f32 to vector<1x256xf32>
    %501 = arith.mulf %500, %483 : vector<1x256xf32>
    %502 = arith.addf %471, %501 : vector<1x256xf32>
    %503 = vector.broadcast %488 : f32 to vector<1x256xf32>
    %504 = arith.mulf %503, %483 : vector<1x256xf32>
    %505 = arith.addf %474, %504 : vector<1x256xf32>
    %506 = vector.broadcast %489 : f32 to vector<1x256xf32>
    %507 = arith.mulf %506, %483 : vector<1x256xf32>
    %508 = arith.addf %477, %507 : vector<1x256xf32>
    %509 = vector.broadcast %490 : f32 to vector<1x256xf32>
    %510 = arith.mulf %509, %483 : vector<1x256xf32>
    %511 = arith.addf %480, %510 : vector<1x256xf32>
    %c3_i32_57 = arith.constant 3 : i32
    %512 = tpu.dynamic_rotate %493 by %c3_i32_57 dim 1 : vector<1x256xf32>, i32 -> vector<1x256xf32>
    %cst_58 = arith.constant 0.000000e+00 : f32
    %513 = vector.broadcast %cst_58 : f32 to vector<1x256xf32>
    %514 = arith.select %23, %512, %513 : vector<1x256xi1>, vector<1x256xf32>
    %515 = arith.addf %290, %514 : vector<1x256xf32>
    %c2_i32_59 = arith.constant 2 : i32
    %516 = tpu.dynamic_rotate %496 by %c2_i32_59 dim 1 : vector<1x256xf32>, i32 -> vector<1x256xf32>
    %cst_60 = arith.constant 0.000000e+00 : f32
    %517 = vector.broadcast %cst_60 : f32 to vector<1x256xf32>
    %518 = arith.select %27, %516, %517 : vector<1x256xi1>, vector<1x256xf32>
    %519 = arith.addf %515, %518 : vector<1x256xf32>
    %c1_i32_61 = arith.constant 1 : i32
    %520 = tpu.dynamic_rotate %499 by %c1_i32_61 dim 1 : vector<1x256xf32>, i32 -> vector<1x256xf32>
    %cst_62 = arith.constant 0.000000e+00 : f32
    %521 = vector.broadcast %cst_62 : f32 to vector<1x256xf32>
    %522 = arith.select %31, %520, %521 : vector<1x256xi1>, vector<1x256xf32>
    %523 = arith.addf %519, %522 : vector<1x256xf32>
    %524 = arith.addf %523, %502 : vector<1x256xf32>
    %c255_i32_63 = arith.constant 255 : i32
    %525 = tpu.dynamic_rotate %505 by %c255_i32_63 dim 1 : vector<1x256xf32>, i32 -> vector<1x256xf32>
    %cst_64 = arith.constant 0.000000e+00 : f32
    %526 = vector.broadcast %cst_64 : f32 to vector<1x256xf32>
    %527 = arith.select %35, %525, %526 : vector<1x256xi1>, vector<1x256xf32>
    %528 = arith.addf %524, %527 : vector<1x256xf32>
    %c254_i32_65 = arith.constant 254 : i32
    %529 = tpu.dynamic_rotate %508 by %c254_i32_65 dim 1 : vector<1x256xf32>, i32 -> vector<1x256xf32>
    %cst_66 = arith.constant 0.000000e+00 : f32
    %530 = vector.broadcast %cst_66 : f32 to vector<1x256xf32>
    %531 = arith.select %39, %529, %530 : vector<1x256xi1>, vector<1x256xf32>
    %532 = arith.addf %528, %531 : vector<1x256xf32>
    %c253_i32_67 = arith.constant 253 : i32
    %533 = tpu.dynamic_rotate %511 by %c253_i32_67 dim 1 : vector<1x256xf32>, i32 -> vector<1x256xf32>
    %cst_68 = arith.constant 0.000000e+00 : f32
    %534 = vector.broadcast %cst_68 : f32 to vector<1x256xf32>
    %535 = arith.select %43, %533, %534 : vector<1x256xi1>, vector<1x256xf32>
    %536 = arith.addf %532, %535 : vector<1x256xf32>
    %537 = arith.negf %536 : vector<1x256xf32>
    %538 = math.exp %537 : vector<1x256xf32>
    %cst_69 = arith.constant 1.000000e+00 : f32
    %539 = vector.broadcast %cst_69 : f32 to vector<1x256xf32>
    %540 = arith.addf %539, %538 : vector<1x256xf32>
    %541 = arith.divf %539, %540 : vector<1x256xf32>
    %542 = vector.shape_cast %541 : vector<1x256xf32> to vector<1x1x256xf32>
    %543 = vector.shape_cast %542 : vector<1x1x256xf32> to vector<1x1x256xf32>
    %544 = vector.broadcast %543 : vector<1x1x256xf32> to vector<1x4x256xf32>
    %c0_70 = arith.constant 0 : index
    %c0_71 = arith.constant 0 : index
    %c0_72 = arith.constant 0 : index
    %545 = vector.load %arg2[%c0_70, %c0_71, %c0_72] : memref<1x4x256xf32, #tpu.memory_space<vmem>>, vector<1x4x256xf32>
    %546 = arith.mulf %545, %544 : vector<1x4x256xf32>
    %c0_73 = arith.constant 0 : index
    %c0_74 = arith.constant 0 : index
    %c0_75 = arith.constant 0 : index
    %547 = vector.load %arg3[%c0_73, %c0_74, %c0_75] : memref<1x4x256xf32, #tpu.memory_space<vmem>>, vector<1x4x256xf32>
    tpu.vector_store %arg3[%c0_73, %c0_74, %c0_75], %546 {strides = array<i32>} : memref<1x4x256xf32, #tpu.memory_space<vmem>>, vector<1x4x256xf32>,
    return
  }
  func.func @transform_0(%arg0: i32) -> i32 {
    %c0_i32 = arith.constant 0 : i32
    %c0_i32_0 = arith.constant 0 : i32
    return %c0_i32 : i32
  }
  func.func @transform_1(%arg0: i32) -> (i32, i32, i32) {
    %c0_i32 = arith.constant 0 : i32
    %c0_i32_0 = arith.constant 0 : i32
    %c0_i32_1 = arith.constant 0 : i32
    return %arg0, %c0_i32, %c0_i32_0 : i32, i32, i32
  }
  func.func @transform_2(%arg0: i32) -> (i32, i32, i32) {
    %c0_i32 = arith.constant 0 : i32
    %c0_i32_0 = arith.constant 0 : i32
    %c0_i32_1 = arith.constant 0 : i32
    return %arg0, %c0_i32, %c0_i32_0 : i32, i32, i32
  }
}

</mosaic_0001>

<bundles_post_ra>
// kernel: tpu_custom_call.1
= control target key start
LH: loop header
LB: loop body
LE: loop exit
PB: predicated region body
PF: predicated region fallthrough
CT: control target
= control target key end

     0   :  { %s3086_s0 = inlined_call_operand.hbm [shape: f32[98], index: 0, kind: input, shape index: {}]   ;;  %s3087_s1 = inlined_call_operand.hbm [shape: f32[2,4,256], index: 1, kind: input, shape index: {}]   ;;  %s3088_s2 = inlined_call_operand.hbm [shape: f32[2,4,256], index: 2, kind: output, shape index: {}]  }
   0x1   :  { %3215 = sst [smem:[#allocation136_spill]] %s3086_s0 }
   0x2   :  { %3216 = sst [smem:[#allocation137_spill]] %s3087_s1 }
   0x3   :  { %3217 = sst [smem:[#allocation138_spill]] %s3088_s2 }
   0x4   :  { %7 = vsyncpa [#allocation5], 0 }
   0x5   :  { %8 = vsyncpa [#allocation3], 0 }
   0x6   :  { %10 = vsyncpa [#allocation3 + $0x1], 0 }
   0x7   :  { %11 = vsyncpa [#allocation4], 0 }
   0x8   :  { %13 = vsyncpa [#allocation4 + $0x1], 0  ;;  %s1540_s9 = smov 0   ;;  %s1542_s10 = smov 0  }
   0x9   :  { %s1544_s11 = smov 0   ;;  %s1546_s12 = smov 0  }
   0xa LB: > { %3218 = sst [smem:[#allocation11_spill]] %s1496_s9  ;;  %s1561_s13 = sadd.s32 4294967295, %s1508_s12   ;;  %s1508_s12 = sphi %s1546_s12, %s3641_s12   ;;  %s1504_s11 = sphi %s1544_s11, %s3644_s11   ;;  %s1500_s10 = sphi %s1542_s10, %s3643_s10   ;;  %s1496_s9 = sphi %s1540_s9, %s3642_s9  }
   0xb   : > { %3219 = sst [smem:[#allocation12_spill]] %s1500_s10  ;;  %s1199_s14 = sadd.s32 4294967294, %s1508_s12  }
   0xc   : > { %3220 = sst [smem:[#allocation13_spill]] %s1504_s11  ;;  %p60_p0 = scmp.ne.s32.totalorder %s1500_s10, %s1496_s9 }
   0xd   : > { %3221 = sst [smem:[#allocation14_spill]] %s1508_s12  ;;  %p3089_p1 = scmp.eq.s32.totalorder %s1561_s13, 0 }
   0xe   : > { %3222 = sst [smem:[#allocation15_spill]] %s1561_s13  ;;  %p90_p3 = scmp.eq.s32.totalorder %s1199_s14, 1 }
   0xf   : > { %p1570_p4 = por %p3089_p1, %p60_p0  ;;  %p1200_p5 = scmp.ge.s32.totalorder %s1508_s12, 1 }
  0x10   : > { %p1575_p6 = por %p90_p3, %p60_p0  ;;  %p97_p7 = scmp.lt.s32.totalorder %s1508_s12, 3 }
  0x11   : > { %s3223_s15 = scalar_select %p1570_p4, 1, 0 }
  0x12   : > { %s3224_s16 = scalar_select %p1575_p6, 1, 0 }
  0x13   : > { %p1580_p8 = pnand %p1200_p5, %p97_p7  ;;  %s1586_s18 = sadd.s32 1, %s1508_s12  }
  0x14   : > { %3225 = sst [smem:[#allocation16_spill]] %s3224_s16  ;;  %s44_s19 = ssub.s32 %s1508_s12, %s1586_s18 }
  0x15   : > { %3227 = sst [smem:[#allocation17_spill]] %s1586_s18  ;;  %p1324_p10 = pneg %p1580_p8 }
  0x16   : > { %s47_s20 = sadd.s32 1, %s1504_s11  ;;  %p1599_p12 = scmp.eq.s32.totalorder %s44_s19, 0 }
  0x17   : > { %p1595_p11 = pnand %p1324_p10, %p3089_p1  ;;  %p54_p13 = scmp.ne.s32.totalorder %s1504_s11, %s1500_s10 }
  0x18   : > { %p55_p0 = scmp.eq.s32.totalorder %s1508_s12, 0  ;;  %p1337_p3 = scmp.lt.s32.totalorder %s1508_s12, 2 }
  0x19   : > { %s3230_s0 = sld [smem:[#allocation136_spill]]  ;;  %p1397_p7 = pneg %p1595_p11 }
  0x1f   : > { %s1395_s25 = scalar_lea.hbm %s3230_s0, 16 }
  0x20   : > { %p1396_p5 = scmp.ne.s32.totalorder %s3230_s0, %s1395_s25  ;;  %p1402_p1 = scmp.lt.u32.totalorder %s1395_s25, %s3230_s0 }
  0x22   : > { %p1398_p10 = pnand %p1397_p7, %p1396_p5 }
  0x24   : > { %p1399_p9 = pneg %p1398_p10 }
  0x26   : > { %p1404_p2 = pnand %p1402_p1, %p1399_p9 }
  0x28   : > { %1407 = shalt.err (!%p1404_p2)
}
  0x29   : > { %s1510_s30 = smov [#allocation2]   ;;  %p56_p1 = por %p55_p0, %p54_p13 }
  0x2a   : > { %1327 = dma.hbm_to_smem (!%p1595_p11), %s3230_s0, 16, %s1510_s30, [#allocation5]  }
  0x2b   : > { %s1626_s5 = scalar_select %p1599_p12, %s1504_s11, %s47_s20  }
  0x2c   : > { %p3232_p2 = scmp.eq.s32.totalorder %s1561_s13, 1  ;;  %s119_s7 = sand.u32 1, %s1504_s11  }
  0x2d   : > { %3231 = sst [smem:[#allocation18_spill]] %s1626_s5  ;;  %s1314_s8 = sshll.u32 %s1508_s12, 7 }
  0x2e   : > { %p1638_p9 = por %p3232_p2, %p54_p13  ;;  %s1203_s14 = sshll.u32 %s119_s7, 3 }
  0x2f   : > { %s3235_s1 = sld [smem:[#allocation137_spill]]  ;;  %s123_s20 = scalar_lea.vmem [#allocation6], %s1203_s14 }
  0x30   : > { %s3233_s6 = scalar_select %p1638_p9, 1, 0 }
  0x31   : > { %s131_s22 = sshll.u32 %s123_s20, 4  ;;  %p1651_p11 = pnand %p1337_p3, %p56_p1  ;;  %s1655_s22 = int_to_ptr.vmem [resolvable:$true] %s131_s22 }
  0x32   : > { %3234 = sst [smem:[#allocation19_spill]] %s3233_s6  ;;  %s120_s25 = scalar_lea.sflag [#allocation3], %s119_s7 }
  0x33   : > { %p1410_p13 = pneg %p1651_p11 }
  0x35   : > { %s1647_s23 = scalar_lea.hbm %s3235_s1, %s1314_s8  ;;  %s1413_s29 = scalar_lea.hbm %s3235_s1, 256 }
  0x36   : > { %s1408_s26 = scalar_lea.hbm %s1647_s23, 128  ;;  %p1414_p3 = scmp.lt.u32.totalorder %s1647_s23, %s3235_s1 }
  0x37   : > { %p1409_p12 = scmp.ne.s32.totalorder %s1647_s23, %s1408_s26  ;;  %p1415_p7 = scmp.lt.u32.totalorder %s1413_s29, %s1408_s26 }
  0x38   : > { %p1417_p1 = scmp.lt.u32.totalorder %s1408_s26, %s1647_s23 }
  0x39   : > { %p1411_p0 = pnand %p1410_p13, %p1409_p12  ;;  %p1416_p10 = por %p1415_p7, %p1414_p3 }
  0x3b   : > { %p1412_p5 = pneg %p1411_p0  ;;  %p1418_p2 = por %p1417_p1, %p1416_p10 }
  0x3d   : > { %p1419_p6 = pnand %p1418_p2, %p1412_p5 }
  0x3f   : > { %1422 = shalt.err (!%p1419_p6)
}
  0x40   : > { %s1423_s4 = scalar_lea.vmem %s1655_s22, 128  ;;  %s1511_s7 = smov [#allocation6]  }
  0x41   : > { %p1424_p12 = scmp.ne.s32.totalorder %s1655_s22, %s1423_s4  ;;  %s1428_s8 = sshll.u32 %s1511_s7, 4  ;;  %s1429_s8 = int_to_ptr.vmem [resolvable:$false] %s1428_s8 }
  0x42   : > { %s1430_s14 = scalar_lea.vmem %s1429_s8, 256  ;;  %p1431_p4 = scmp.lt.s32.totalorder %s1655_s22, %s1429_s8 }
  0x43   : > { %p1426_p0 = pnand %p1424_p12, %p1410_p13  ;;  %p1432_p3 = scmp.lt.s32.totalorder %s1430_s14, %s1423_s4 }
  0x45   : > { %p1427_p9 = pneg %p1426_p0  ;;  %p1433_p7 = por %p1432_p3, %p1431_p4 }
  0x47   : > { %p1434_p10 = pnand %p1433_p7, %p1427_p9 }
  0x49   : > { %1437 = shalt.err (!%p1434_p10)
}
  0x4a   : > { %1331 = dma.hbm_to_vmem [thread:$0]  (!%p1651_p11), %s1647_s23, 128, %s1655_s22, %s120_s25  }
  0x4b   : > { %140 = sbr.rel (%p1580_p8) target bundleno = 514 (0x202), region = 28 }
  0x52   : > { %p3237_p6 = scmp.eq.s32.totalorder %s1561_s13, 0 }
  0x54   : > { %1483 = dma.done.wait (%p3237_p6), [#allocation5], 16   ;;  %p3238_p13 = pmov %p3237_p6 }
  0x55   : > { %s1689_s19 = sand.u32 1, %s1500_s10   ;;  %p3241_p4 = scmp.ne.s32.totalorder %s3223_s15, 0 }
  0x56   : > { %1485 = vsyncadd (%p3238_p13), [#allocation5], 4294967280  ;;  %3239 = sst [smem:[#allocation20_spill]] %s1689_s19  ;;  %s3092_s21 = sshll.u32 %s1689_s19, 3 }
  0x57   : > { %s147_s20 = scalar_lea.sflag [#allocation3], %s1689_s19  ;;  %s1695_s23 = scalar_lea.vmem [#allocation6], %s3092_s21 }
  0x58   : > { %3240 = sst [smem:[#allocation21_spill]] %s1695_s23 }
  0x59   : > { %1487 = dma.done.wait (%p3241_p4), %s147_s20, 128  }
  0x5a   : > { %1489 = vsyncadd (%p3241_p4), %s147_s20, 4294967168 }
  0x5b   : > { %155 = sfence }
  0x5c   : > { %v172_v0 = vld [vmem:[%s1695_s23] sm:$0xff]  ;;  %vm176_vm0 = vcmask 1043456   ;;  %s1512_s15 = smov 32   ;;  %s1513_s17 = smov 48   ;;  %v3181_v30 = vlaneseq }
  0x5d   : > { %v177_v1 = vsel %vm176_vm0, %v172_v0, 0.0  ;;  %v174_v2 = vcombine.high %v172_v0, %v172_v0  ;;  %v191_v14 = vsel %vm176_vm0, %v172_v0, -inf  ;;  %s1514_s22 = smov 16   ;;  %s1515_s24 = smov 112  }
  0x5e   : > { %v178_v3 = vrot.slane %v177_v1, 4  ;;  %v192_v19 = vrot.slane %v191_v14, 4  ;;  %s1516_s25 = smov 96   ;;  %s1517_s26 = smov 80   ;;  %v1831_v31 = vand.u32 127, %v3181_v30 }
  0x5f   : > { %v184_v4 = vsel %vm176_vm0, %v174_v2, 0.0  ;;  %v198_v13 = vsel %vm176_vm0, %v174_v2, -inf  ;;  %s1738_s27 = sld [smem:[#allocation2 + $0x7]]  ;;  %s1740_s28 = sld [smem:[#allocation2 + $0x8]] }
  0x60   : > { %v179_v5 = vadd.f32 %v178_v3, %v177_v1  ;;  %v185_v6 = vrot.slane %v184_v4, 4  ;;  %v199_v18 = vrot.slane %v198_v13, 4  ;;  %v193_v21 = vmax.f32 %v191_v14, %v192_v19  ;;  %s1742_s29 = sld [smem:[#allocation2 + $0x9]]  ;;  %s1744_s30 = sld [smem:[#allocation2 + $0xa]] }
  0x61   : > { %s1746_s3 = sld [smem:[#allocation2 + $0xb]]  ;;  %s1748_s4 = sld [smem:[#allocation2 + $0xc]]  ;;  %v1850_v40 = vadd.s32 128, %v1831_v31  ;;  %vm311_vm1 = vcmp.lt.s32.totalorder %v1831_v31, 32  ;;  %vm236_vm2 = vcmp.ge.s32.totalorder %v1831_v31, 32  ;;  %vm362_vm3 = vcmp.lt.s32.totalorder %v1831_v31, 16 }
  0x62   : > { %v180_v7 = vrot.slane %v179_v5, 2  ;;  %v186_v8 = vadd.f32 %v185_v6, %v184_v4  ;;  %v200_v20 = vmax.f32 %v198_v13, %v199_v18  ;;  %v194_v23 = vrot.slane %v193_v21, 2  ;;  %s1750_s7 = sld [smem:[#allocation2 + $0xd]]  ;;  %s1752_s8 = sld [smem:[#allocation2 + $0x11]] }
  0x63   : > { %s1754_s14 = sld [smem:[#allocation2]]  ;;  %s1756_s20 = sld [smem:[#allocation2 + $0xe]]  ;;  %vm240_vm4 = vcmp.ge.s32.totalorder %v1831_v31, 16  ;;  %vm455_vm5 = vcmp.lt.s32.totalorder %v1831_v31, 112  ;;  %vm245_vm6 = vcmp.lt.s32.totalorder %v1850_v40, 240  ;;  %vm506_vm7 = vcmp.lt.s32.totalorder %v1831_v31, 96 }
  0x64   : > { %v181_v9 = vadd.f32 %v180_v7, %v179_v5  ;;  %v187_v10 = vrot.slane %v186_v8, 2  ;;  %v201_v22 = vrot.slane %v200_v20, 2  ;;  %v195_v25 = vmax.f32 %v193_v21, %v194_v23  ;;  %s1770_s21 = sld [smem:[#allocation2 + $0x15]]  ;;  %s1772_s0 = sld [smem:[#allocation2 + $0xf]] }
  0x65   : > { %3246 = sst [smem:[#allocation26_spill]] %s1738_s27  ;;  %s1774_s1 = sld [smem:[#allocation2 + $0x1c]]  ;;  %v323_v32 = vstv %s1738_s27  ;;  %v328_v33 = vstv %s1740_s28  ;;  %vm260_vm8 = vcmp.lt.s32.totalorder %v1831_v31, 48  ;;  %vm232_vm9 = vcmp.ge.s32.totalorder %v1831_v31, 48 }
  0x66   : > { %v182_v11 = vrot.slane %v181_v9, 1  ;;  %v188_v12 = vadd.f32 %v187_v10, %v186_v8  ;;  %v202_v24 = vmax.f32 %v200_v20, %v201_v22  ;;  %v196_v27 = vrot.slane %v195_v25, 1  ;;  %3247 = sst [smem:[#allocation27_spill]] %s1740_s28  ;;  %s1776_s5 = sld [smem:[#allocation2 + $0x1d]] }
  0x67   : > { %3248 = sst [smem:[#allocation28_spill]] %s1742_s29  ;;  %s1778_s11 = sld [smem:[#allocation2 + $0x23]]  ;;  %v333_v34 = vstv %s1742_s29  ;;  %v338_v35 = vstv %s1744_s30  ;;  %v343_v36 = vstv %s1746_s3  ;;  %v348_v37 = vstv %s1748_s4 }
  0x68   : > { %v1702_v15 = vadd.f32 %v182_v11, %v181_v9  ;;  %v189_v16 = vrot.slane %v188_v12, 1  ;;  %v203_v26 = vrot.slane %v202_v24, 1  ;;  %v1722_v29 = vmax.f32 %v195_v25, %v196_v27  ;;  %3249 = sst [smem:[#allocation29_spill]] %s1744_s30  ;;  %s1780_s10 = sld [smem:[#allocation2 + $0x10]] }
  0x69   : > { %3250 = sst [smem:[#allocation30_spill]] %s1746_s3  ;;  %s1782_s18 = sld [smem:[#allocation2 + $0x31]]  ;;  %v353_v38 = vstv %s1750_s7  ;;  %v374_v41 = vstv %s1756_s20  ;;  %vm249_vm10 = vcmp.lt.s32.totalorder %v1850_v40, 224  ;;  %vm557_vm11 = vcmp.lt.s32.totalorder %v1831_v31, 80 }
  0x6a   : > { %3242 = vst [vmem:[#allocation22_spill] sm:$0xff] %v1702_v15  ;;  %307 = vrot.lane.b32.xlu1 %v1702_v15, %s1512_s15  ;;  %256 = vrot.lane.b32.xlu0 %v1702_v15, %s1513_s17  ;;  %v1707_v17 = vadd.f32 %v189_v16, %v188_v12  ;;  %v1720_v28 = vmax.f32 %v202_v24, %v203_v26  ;;  %3245 = vst [vmem:[#allocation25_spill] sm:$0xff] %v1722_v29  ;;  %3251 = sst [smem:[#allocation31_spill]] %s1748_s4  ;;  %s1784_s12 = sld [smem:[#allocation2 + $0x32]]  ;;  %v416_v42 = vstv %s1770_s21 }
  0x6b   : > { %3252 = sst [smem:[#allocation32_spill]] %s1750_s7  ;;  %s1786_s16 = sld [smem:[#allocation2 + $0x33]]  ;;  %v379_v50 = vstv %s1772_s0  ;;  %v3203_v52 = vstv %s1774_s1  ;;  %v1912_v6 = vmul.f32 %v416_v42, %v1702_v15  ;;  %vm253_vm12 = vcmp.lt.s32.totalorder %v1850_v40, 208 }
  0x6c   : > { %3243 = vst [vmem:[#allocation23_spill] sm:$0xff] %v1707_v17  ;;  %3244 = vst [vmem:[#allocation24_spill] sm:$0xff] %v1720_v28  ;;  %3253 = sst [smem:[#allocation33_spill]] %s1752_s8  ;;  %s1788_s9 = sld [smem:[#allocation2 + $0x34]]  ;;  %v1875_v51 = vmul.f32 %v416_v42, %v1707_v17  ;;  %vm619_vm13 = vcmp.lt.s32.totalorder %v1831_v31, 2  ;;  %vm608_vm14 = vcmp.lt.s32.totalorder %v1831_v31, 3 }
  0x6d   : > { %3254 = sst [smem:[#allocation34_spill]] %s1754_s14  ;;  %s1790_s2 = sld [smem:[#allocation2 + $0x35]] }
  0x6e   : > { %358 = vrot.lane.b32.xlu0 %v1702_v15, %s1514_s22  ;;  %309 = vrot.lane.b32.xlu1 %v1707_v17, %s1512_s15  ;;  %3255 = sst [smem:[#allocation35_spill]] %s1756_s20  ;;  %s1792_s6 = sld [smem:[#allocation2 + $0x36]] }
  0x6f   : > { %3262 = sst [smem:[#allocation42_spill]] %s1772_s0  ;;  %s1794_s23 = sld [smem:[#allocation2 + $0x37]] }
  0x70   : > { %3263 = sst [smem:[#allocation43_spill]] %s1774_s1  ;;  %s1798_s13 = sld [smem:[#allocation2 + $0x38]] }
  0x71   : > { %3264 = sst [smem:[#allocation44_spill]] %s1776_s5  ;;  %s1796_s19 = sld [smem:[#allocation2 + $0x24]] }
  0x72   : > { %451 = vrot.lane.b32.xlu0 %v1702_v15, %s1515_s24  ;;  %360 = vrot.lane.b32.xlu1 %v1707_v17, %s1514_s22  ;;  %3265 = sst [smem:[#allocation45_spill]] %s1778_s11  ;;  %s1800_s5 = sld [smem:[#allocation2 + $0x39]] }
  0x73   : > { %3266 = sst [smem:[#allocation46_spill]] %s1780_s10  ;;  %s1802_s10 = sld [smem:[#allocation2 + $0x3a]] }
  0x74   : > { %3267 = sst [smem:[#allocation47_spill]] %s1782_s18  ;;  %s1846_s27 = sld [smem:[#allocation2 + $0x19]] }
  0x75   : > { %3268 = sst [smem:[#allocation48_spill]] %s1784_s12  ;;  %s1804_s12 = sld [smem:[#allocation2 + $0x3b]] }
  0x76   : > { %502 = vrot.lane.b32.xlu0 %v1702_v15, %s1516_s25  ;;  %453 = vrot.lane.b32.xlu1 %v1707_v17, %s1515_s24  ;;  %3269 = sst [smem:[#allocation49_spill]] %s1786_s16  ;;  %s1806_s16 = sld [smem:[#allocation2 + $0x3c]] }
  0x77   : > { %3270 = sst [smem:[#allocation50_spill]] %s1788_s9  ;;  %s1854_s29 = sld [smem:[#allocation2 + $0x28]] }
  0x78   : > { %3271 = sst [smem:[#allocation51_spill]] %s1790_s2  ;;  %s1808_s2 = sld [smem:[#allocation2 + $0x3d]] }
  0x79   : > { %3272 = sst [smem:[#allocation52_spill]] %s1792_s6  ;;  %s1810_s6 = sld [smem:[#allocation2 + $0x3e]] }
  0x7a   : > { %504 = vrot.lane.b32.xlu1 %v1707_v17, %s1516_s25  ;;  %258 = vrot.lane.b32.xlu0 %v1707_v17, %s1513_s17  ;;  %3273 = sst [smem:[#allocation53_spill]] %s1794_s23  ;;  %s1812_s23 = sld [smem:[#allocation2 + $0x2a]]  ;;  %v436_v18 = vstv %s1846_s27 }
  0x7b   : > { %3274 = sst [smem:[#allocation54_spill]] %s1796_s19  ;;  %s1814_s19 = sld [smem:[#allocation2 + $0x16]]  ;;  %v1969_v30 = vmul.f32 %v436_v18, %v1707_v17  ;;  %v1980_v14 = vmul.f32 %v436_v18, %v1702_v15 }
  0x7c   : > { %3275 = sst [smem:[#allocation55_spill]] %s1798_s13  ;;  %s1856_s4 = sld [smem:[#allocation2 + $0x22]] }
  0x7d   : > { %3276 = sst [smem:[#allocation56_spill]] %s1800_s5  ;;  %s1820_s5 = sld [smem:[#allocation2 + $0x12]]  ;;  %3323 = vst [vmem:[#allocation77_spill] sm:$0xff] %v1980_v14 }
  0x7e   : > { %555 = vrot.lane.b32.xlu1 %v1707_v17, %s1517_s26  ;;  %553 = vrot.lane.b32.xlu0 %v1702_v15, %s1517_s26  ;;  %3277 = sst [smem:[#allocation57_spill]] %s1802_s10  ;;  %s1816_s10 = sld [smem:[#allocation2 + $0x1e]] }
  0x7f   : > { %3278 = sst [smem:[#allocation58_spill]] %s1804_s12  ;;  %s1818_s12 = sld [smem:[#allocation2 + $0x25]] }
  0x80   : > { %3279 = sst [smem:[#allocation59_spill]] %s1806_s16  ;;  %s1822_s16 = sld [smem:[#allocation2 + $0x17]] }
  0x81   : > { %3280 = sst [smem:[#allocation60_spill]] %s1808_s2  ;;  %s1824_s2 = sld [smem:[#allocation2 + $0x20]]  ;;  %v421_v1 = vstv %s1814_s19 }
  0x82   : > { %674 = vrot.lane.b32.xlu1 %v1720_v28, %s1513_s17  ;;  %672 = vrot.lane.b32.xlu0 %v1722_v29, %s1513_s17  ;;  %s1760_s17 = sld [smem:[#allocation2 + $0x2]]  ;;  %3281 = sst [smem:[#allocation61_spill]] %s1810_s6  ;;  %v1927_v11 = vmul.f32 %v421_v1, %v1707_v17  ;;  %v1930_v12 = vmul.f32 %v421_v1, %v1702_v15 }
  0x83   : > { %3282 = sst [smem:[#allocation62_spill]] %s1812_s23  ;;  %s1828_s23 = sld [smem:[#allocation2 + $0x13]] }
  0x84   : > { %3283 = sst [smem:[#allocation63_spill]] %s1816_s10  ;;  %s1826_s6 = sld [smem:[#allocation2 + $0x27]] }
  0x85   : > { %3284 = sst [smem:[#allocation64_spill]] %s1818_s12  ;;  %s1838_s12 = sld [smem:[#allocation2 + $0x14]] }
  0x86   : > { %724 = vrot.lane.b32.xlu1 %v1720_v28, %s1512_s15  ;;  %722 = vrot.lane.b32.xlu0 %v1722_v29, %s1512_s15  ;;  %s1758_s15 = sld [smem:[#allocation2 + $0x1]]  ;;  %3285 = sst [smem:[#allocation65_spill]] %s1820_s5  ;;  %v426_v10 = vstv %s1822_s16 }
  0x87   : > { %3286 = sst [smem:[#allocation66_spill]] %s1824_s2  ;;  %s1836_s5 = sld [smem:[#allocation2 + $0x21]]  ;;  %v1947_v21 = vmul.f32 %v426_v10, %v1707_v17  ;;  %v1958_v26 = vmul.f32 %v426_v10, %v1702_v15 }
  0x88   : > { %3257 = sst [smem:[#allocation37_spill]] %s1760_s17  ;;  %s1862_s30 = sld [smem:[#allocation2 + $0x2c]] }
  0x89   : > { %3288 = sst [smem:[#allocation68_spill]] %s1828_s23  ;;  %s1864_s28 = sld [smem:[#allocation2 + $0x1a]]  ;;  %v399_v20 = vstv %s1828_s23 }
  0x8a   : > { %774 = vrot.lane.b32.xlu1 %v1720_v28, %s1514_s22  ;;  %772 = vrot.lane.b32.xlu0 %v1722_v29, %s1514_s22  ;;  %s1762_s22 = sld [smem:[#allocation2 + $0x3]]  ;;  %3287 = sst [smem:[#allocation67_spill]] %s1826_s6 }
  0x8b   : > { %s1844_s6 = sld [smem:[#allocation2 + $0x2b]]  ;;  %3290 = sst [smem:[#allocation70_spill]] %s1854_s29 }
  0x8c   : > { %3256 = sst [smem:[#allocation36_spill]] %s1758_s15  ;;  %s3296_s20 = sld [smem:[#allocation46_spill]] }
  0x8d   : > { %3291 = sst [smem:[#allocation71_spill]] %s1856_s4  ;;  %s1870_s4 = sld [smem:[#allocation2 + $0x2e]] }
  0x8e   : > { %866 = vrot.lane.b32.xlu1 %v1720_v28, %s1515_s24  ;;  %864 = vrot.lane.b32.xlu0 %v1722_v29, %s1515_s24  ;;  %s1764_s24 = sld [smem:[#allocation2 + $0x4]]  ;;  %3294 = sst [smem:[#allocation72_spill]] %s1862_s30 }
  0x8f   : > { %s1872_s15 = sld [smem:[#allocation2 + $0x1b]]  ;;  %s1888_s29 = sld [smem:[#allocation2 + $0x30]]  ;;  %v441_v23 = vstv %s1864_s28 }
  0x90   : > { %3258 = sst [smem:[#allocation38_spill]] %s1762_s22  ;;  %s1898_s18 = sld [smem:[#allocation2 + $0x4d]]  ;;  %v1983_v1 = vmul.f32 %v441_v23, %v1707_v17  ;;  %v1992_v39 = vmul.f32 %v441_v23, %v1702_v15 }
  0x91   : > { %3289 = sst [smem:[#allocation69_spill]] %s1844_s6  ;;  %s1890_s1 = sld [smem:[#allocation2 + $0x3f]] }
  0x92   : > { %916 = vrot.lane.b32.xlu1 %v1720_v28, %s1516_s25  ;;  %914 = vrot.lane.b32.xlu0 %v1722_v29, %s1516_s25  ;;  %s1766_s25 = sld [smem:[#allocation2 + $0x5]]  ;;  %v384_v58 = vstv %s3296_s20  ;;  %s1904_s8 = sld [smem:[#allocation2 + $0x54]]  ;;  %3324 = vst [vmem:[#allocation78_spill] sm:$0xff] %v1983_v1  ;;  %3325 = vst [vmem:[#allocation79_spill] sm:$0xff] %v1992_v39 }
  0x93   : > { %3298 = sst [smem:[#allocation46_spill]] %s1870_s4  ;;  %s1906_s3 = sld [smem:[#allocation2 + $0x5b]] }
  0x94   : > { %3259 = sst [smem:[#allocation39_spill]] %s1764_s24  ;;  %s1880_s24 = sld [smem:[#allocation2 + $0x2f]] }
  0x95   : > { %3307 = sst [smem:[#allocation75_spill]] %s1888_s29  ;;  %s3314_s17 = sld [smem:[#allocation65_spill]]  ;;  %v446_v42 = vstv %s1872_s15 }
  0x96   : > { %966 = vrot.lane.b32.xlu1 %v1720_v28, %s1517_s26  ;;  %964 = vrot.lane.b32.xlu0 %v1722_v29, %s1517_s26  ;;  %s1768_s26 = sld [smem:[#allocation2 + $0x6]]  ;;  %3312 = sst [smem:[#allocation76_spill]] %s1898_s18  ;;  %v1995_v10 = vmul.f32 %v446_v42, %v1707_v17  ;;  %v2004_v8 = vmul.f32 %v446_v42, %v1702_v15 }
  0x97   : > { %s1914_s14 = sld [smem:[#allocation2 + $0x40]]  ;;  %s1916_s22 = sld [smem:[#allocation2 + $0x41]] }
  0x98   : > { %3260 = sst [smem:[#allocation40_spill]] %s1766_s25  ;;  %s1922_s25 = sld [smem:[#allocation2 + $0x47]]  ;;  %3326 = vst [vmem:[#allocation80_spill] sm:$0xff] %v1995_v10  ;;  %3328 = vst [vmem:[#allocation81_spill] sm:$0xff] %v2004_v8 }
  0x99   : > { %s1924_s30 = sld [smem:[#allocation2 + $0x4e]]  ;;  %s1934_s11 = sld [smem:[#allocation2 + $0x55]] }
  0x9a   : > { %3302 = sst [smem:[#allocation73_spill]] %s1880_s24  ;;  %s1896_s24 = sld [smem:[#allocation2 + $0x46]] }
  0x9b   : > { %s1936_s16 = sld [smem:[#allocation2 + $0x48]]  ;;  %v3200_v16 = vstv %s3314_s17  ;;  %s3316_s7 = sld [smem:[#allocation72_spill]] }
  0x9c   : > { %3261 = sst [smem:[#allocation41_spill]] %s1768_s26  ;;  %s1882_s26 = sld [smem:[#allocation2 + $0x29]] }
  0x9d   : > { %s1942_s0 = sld [smem:[#allocation2 + $0x5c]]  ;;  %s1944_s13 = sld [smem:[#allocation2 + $0x43]] }
  0x9e   : > { %s1952_s9 = sld [smem:[#allocation2 + $0x4a]]  ;;  %s1954_s10 = sld [smem:[#allocation2 + $0x44]]  ;;  %v834_v22 = vstv %s1922_s25 }
  0x9f   : > { %s1962_s27 = sld [smem:[#allocation2 + $0x4f]]  ;;  %s1964_s23 = sld [smem:[#allocation2 + $0x51]]  ;;  %v2035_v42 = vmul.f32 %v834_v22, %v1720_v28  ;;  %v2044_v4 = vmul.f32 %v834_v22, %v1722_v29 }
  0xa0   : > { %s1973_s19 = sld [smem:[#allocation2 + $0x56]]  ;;  %s1975_s6 = sld [smem:[#allocation2 + $0x4b]]  ;;  %v829_v25 = vstv %s1896_s24 }
  0xa1   : > { %s1986_s15 = sld [smem:[#allocation2 + $0x5d]]  ;;  %s1988_s21 = sld [smem:[#allocation2 + $0x4c]]  ;;  %v2012_v23 = vmul.f32 %v829_v25, %v1720_v28  ;;  %v839_v3 = vstv %s1936_s16  ;;  %v2023_v7 = vmul.f32 %v829_v25, %v1722_v29  ;;  %3335 = vst [vmem:[#allocation87_spill] sm:$0xff] %v2035_v42  ;;  %3336 = vst [vmem:[#allocation88_spill] sm:$0xff] %v2044_v4 }
  0xa2   : > { %3303 = sst [smem:[#allocation74_spill]] %s1882_s26  ;;  %s3319_s26 = sld [smem:[#allocation46_spill]]  ;;  %v2047_v62 = vmul.f32 %v839_v3, %v1720_v28  ;;  %v2053_v63 = vmul.f32 %v839_v3, %v1722_v29 }
  0xa3   : > { %s1998_s4 = sld [smem:[#allocation2 + $0x58]]  ;;  %s2000_s24 = sld [smem:[#allocation2 + $0x52]]  ;;  %3330 = vst [vmem:[#allocation82_spill] sm:$0xff] %v2012_v23  ;;  %3333 = vst [vmem:[#allocation85_spill] sm:$0xff] %v2023_v7 }
  0xa4   : > { %3320 = sst [smem:[#allocation65_spill]] %s1954_s10  ;;  %s2008_s2 = sld [smem:[#allocation2 + $0x59]]  ;;  %v849_v0 = vstv %s1952_s9  ;;  %3337 = vst [vmem:[#allocation89_spill] sm:$0xff] %v2047_v62  ;;  %3338 = vst [vmem:[#allocation90_spill] sm:$0xff] %v2053_v63 }
  0xa5   : > { %s2017_s28 = sld [smem:[#allocation2 + $0x45]]  ;;  %s2019_s29 = sld [smem:[#allocation2 + $0x53]]  ;;  %v2059_v22 = vmul.f32 %v849_v0, %v1720_v28  ;;  %v2063_v57 = vmul.f32 %v849_v0, %v1722_v29 }
  0xa6   : > { %s2027_s25 = sld [smem:[#allocation2 + $0x5f]]  ;;  %s2029_s18 = sld [smem:[#allocation2 + $0x60]]  ;;  %v854_v2 = vstv %s1975_s6 }
  0xa7   : > { %s2040_s16 = sld [smem:[#allocation2 + $0x5a]]  ;;  %3339 = vst [vmem:[#allocation91_spill] sm:$0xff] %v2059_v22  ;;  %3340 = vst [vmem:[#allocation92_spill] sm:$0xff] %v2063_v57  ;;  %v859_v61 = vstv %s1988_s21  ;;  %v2075_v59 = vmul.f32 %v854_v2, %v1720_v28  ;;  %v2083_v9 = vmul.f32 %v854_v2, %v1722_v29  ;;  %s3366_s9 = sld [smem:[#allocation66_spill]] }
  0xa8   : > { %v2094_v3 = vmul.f32 %v859_v61, %v1722_v29  ;;  %s3374_s20 = sld [smem:[#allocation38_spill]]  ;;  %s3383_s6 = sld [smem:[#allocation39_spill]] }
  0xa9   : > { %3327 = sst [smem:[#allocation72_spill]] %s2000_s24  ;;  %3344 = vst [vmem:[#allocation93_spill] sm:$0xff] %v2075_v59  ;;  %3345 = vst [vmem:[#allocation94_spill] sm:$0xff] %v2083_v9  ;;  %s3378_s24 = sld [smem:[#allocation37_spill]] }
  0xaa   : > { %3329 = sst [smem:[#allocation46_spill]] %s2008_s2  ;;  %3349 = vst [vmem:[#allocation96_spill] sm:$0xff] %v2094_v3  ;;  %s3358_s2 = sld [smem:[#allocation43_spill]] }
  0xab   : > { %3331 = sst [smem:[#allocation83_spill]] %s2017_s28  ;;  %s3363_s28 = sld [smem:[#allocation63_spill]] }
  0xac   : > { %3332 = sst [smem:[#allocation84_spill]] %s2019_s29  ;;  %s3368_s29 = sld [smem:[#allocation34_spill]] }
  0xad   : > { %3334 = sst [smem:[#allocation86_spill]] %s2029_s18  ;;  %s3361_s18 = sld [smem:[#allocation44_spill]]  ;;  %v3377_v22 = vstv %s3366_s9 }
  0xae   : > { %v3380_v62 = vmov %v3377_v22  ;;  %s3395_s21 = sld [smem:[#allocation41_spill]]  ;;  %s3401_s10 = sld [smem:[#allocation45_spill]] }
  0xaf   : > { %s3413_s9 = sld [smem:[#allocation49_spill]] }
  0xdc   : > { %v308_v5 = vpop.permute.xlu1 %307  ;;  %v2031_v18 = vpop.permute.xlu0 %256 }
  0xe0   : > { %v359_v56 = vpop.permute.xlu0 %358  ;;  %v310_v55 = vpop.permute.xlu1 %309 }
  0xe1   : > { %v312_v53 = vsel %vm311_vm1, %v308_v5, %v310_v55  ;;  %v313_v0 = vsel %vm311_vm1, %v310_v55, %v308_v5  ;;  %v2087_v5 = vmul.f32 %v859_v61, %v1720_v28  ;;  %v3370_v28 = vstv %s3358_s2  ;;  %s3403_s2 = sld [smem:[#allocation62_spill]] }
  0xe2   : > { %v314_v25 = vsel %vm236_vm2, %v313_v0, 0.0  ;;  %v2098_v2 = vmul.f32 %v323_v32, %v312_v53  ;;  %v2102_v55 = vmul.f32 %v328_v33, %v312_v53  ;;  %v2106_v48 = vmul.f32 %v333_v34, %v312_v53 }
  0xe3   : > { %3346 = vst [vmem:[#allocation95_spill] sm:$0xff] %v2087_v5  ;;  %v2111_v61 = vmul.f32 %v323_v32, %v314_v25  ;;  %v2115_v60 = vmul.f32 %v328_v33, %v314_v25  ;;  %v2119_v45 = vmul.f32 %v333_v34, %v314_v25  ;;  %v339_v0 = vmul.f32 %v338_v35, %v314_v25 }
  0xe4   : > { %v452_v49 = vpop.permute.xlu0 %451  ;;  %v361_v47 = vpop.permute.xlu1 %360  ;;  %v340_v46 = vmul.f32 %v338_v35, %v312_v53  ;;  %v2132_v32 = vmul.f32 %v343_v36, %v314_v25  ;;  %v2138_v34 = vmul.f32 %v343_v36, %v312_v53  ;;  %v2142_v27 = vmul.f32 %v348_v37, %v314_v25 }
  0xe5   : > { %v2123_v44 = vsel %vm362_vm3, %v359_v56, %v361_v47  ;;  %v364_v33 = vsel %vm362_vm3, %v361_v47, %v359_v56  ;;  %v2146_v43 = vmul.f32 %v348_v37, %v312_v53  ;;  %v2155_v47 = vmul.f32 %v353_v38, %v314_v25 }
  0xe6   : > { %3352 = vst [vmem:[#allocation97_spill] sm:$0xff] %v2123_v44  ;;  %3355 = vst [vmem:[#allocation98_spill] sm:$0xff] %v2142_v27  ;;  %v2150_v35 = vsel %vm240_vm4, %v364_v33, 0.0  ;;  %v2159_v36 = vmul.f32 %v353_v38, %v312_v53  ;;  %v2165_v33 = vmul.f32 %v374_v41, %v2123_v44  ;;  %v2170_v24 = vmul.f32 %v379_v50, %v2123_v44 }
  0xe7   : > { %3356 = vst [vmem:[#allocation99_spill] sm:$0xff] %v2150_v35  ;;  %3359 = vst [vmem:[#allocation100_spill] sm:$0xff] %v2155_v47  ;;  %v2181_v25 = vmul.f32 %v384_v58, %v2123_v44  ;;  %v2186_v19 = vmul.f32 %v3200_v16, %v2123_v44  ;;  %v375_v54 = vmul.f32 %v374_v41, %v2150_v35  ;;  %v3367_v41 = vstv %s3314_s17  ;;  %s3376_s17 = sld [smem:[#allocation36_spill]] }
  0xe8   : > { %3360 = vst [vmem:[#allocation101_spill] sm:$0xff] %v2159_v36  ;;  %v503_v56 = vpop.permute.xlu0 %502  ;;  %v454_v37 = vpop.permute.xlu1 %453  ;;  %v2218_v15 = vmul.f32 %v3367_v41, %v2150_v35 }
  0xe9   : > { %v2174_v38 = vsel %vm455_vm5, %v452_v49, %v454_v37  ;;  %v457_v53 = vsel %vm455_vm5, %v454_v37, %v452_v49  ;;  %v2198_v49 = vmul.f32 %v379_v50, %v2150_v35  ;;  %v2203_v37 = vmul.f32 %v399_v20, %v2123_v44 }
  0xea   : > { %3362 = vst [vmem:[#allocation102_spill] sm:$0xff] %v2174_v38  ;;  %v2190_v13 = vsel %vm245_vm6, %v457_v53, 0.0  ;;  %v2208_v16 = vmul.f32 %v3203_v52, %v2174_v38  ;;  %v2213_v53 = vmul.f32 %v384_v58, %v2150_v35  ;;  %v2223_v50 = vmul.f32 %v399_v20, %v2150_v35 }
  0xeb   : > { %3364 = vst [vmem:[#allocation103_spill] sm:$0xff] %v2190_v13  ;;  %3365 = vst [vmem:[#allocation104_spill] sm:$0xff] %v2203_v37  ;;  %v2228_v29 = vmul.f32 %v3370_v28, %v2190_v13  ;;  %v3371_v58 = vstv %s3361_s18  ;;  %v3373_v20 = vstv %s3363_s28  ;;  %v2263_v63 = vmul.f32 %v3377_v22, %v2190_v13  ;;  %s3404_s18 = sld [smem:[#allocation47_spill]]  ;;  %s3411_s28 = sld [smem:[#allocation48_spill]] }
  0xec   : > { %3369 = vst [vmem:[#allocation105_spill] sm:$0xff] %v2223_v50  ;;  %v505_v17 = vpop.permute.xlu1 %504  ;;  %v259_v52 = vpop.permute.xlu0 %258  ;;  %v2233_v3 = vmul.f32 %v3371_v58, %v2190_v13  ;;  %v3372_v41 = vmov %v3371_v58  ;;  %v2243_v9 = vmul.f32 %v3373_v20, %v2174_v38  ;;  %v2268_v4 = vmul.f32 %v3380_v62, %v2174_v38 }
  0xed   : > { %v2238_v5 = vmul.f32 %v3372_v41, %v2174_v38  ;;  %v508_v59 = vsel %vm506_vm7, %v505_v17, %v503_v56  ;;  %v261_v28 = vsel %vm260_vm8, %v2031_v18, %v259_v52  ;;  %v262_v58 = vsel %vm260_vm8, %v259_v52, %v2031_v18  ;;  %3379 = vst [vmem:[#allocation106_spill] sm:$0xff] %v2263_v63 }
  0xee   : > { %v3375_v41 = vmov %v3373_v20  ;;  %v263_v20 = vsel %vm232_vm9, %v262_v58, 0.0  ;;  %3381 = vst [vmem:[#allocation107_spill] sm:$0xff] %v2268_v4  ;;  %v3382_v52 = vstv %s1836_s5  ;;  %v3389_v22 = vstv %s1838_s12  ;;  %s3393_s5 = sld [smem:[#allocation40_spill]] }
  0xef   : > { %v2256_v57 = vmul.f32 %v3375_v41, %v2190_v13  ;;  %v2273_v18 = vmul.f32 %v3382_v52, %v2190_v13  ;;  %v3385_v41 = vstv %s3368_s29  ;;  %v3387_v58 = vmov %v3382_v52  ;;  %s3416_s29 = sld [smem:[#allocation50_spill]] }
  0xf0   : > { %v273_v42 = vmul.f32 %v3385_v41, %v263_v20  ;;  %v3386_v7 = vmov %v3385_v41  ;;  %v2282_v8 = vmul.f32 %v3387_v58, %v2174_v38  ;;  %v2287_v35 = vmul.f32 %v3389_v22, %v2123_v44  ;;  %v556_v58 = vpop.permute.xlu1 %555  ;;  %v554_v38 = vpop.permute.xlu0 %553 }
  0xf1   : > { %3384 = vst [vmem:[#allocation108_spill] sm:$0xff] %v2273_v18  ;;  %v274_v23 = vmul.f32 %v3386_v7, %v261_v28  ;;  %v2291_v62 = vsel %vm506_vm7, %v503_v56, %v505_v17  ;;  %v2295_v52 = vsel %vm249_vm10, %v508_v59, 0.0  ;;  %v3391_v13 = vstv %s3374_s20  ;;  %s3420_s20 = sld [smem:[#allocation51_spill]] }
  0xf2   : > { %3388 = vst [vmem:[#allocation109_spill] sm:$0xff] %v2282_v8  ;;  %3390 = vst [vmem:[#allocation110_spill] sm:$0xff] %v2287_v35  ;;  %v288_v41 = vmul.f32 %v3391_v13, %v263_v20  ;;  %v3392_v10 = vmov %v3391_v13  ;;  %v3394_v8 = vstv %s3376_s17  ;;  %v3397_v56 = vstv %s3378_s24  ;;  %s3423_s17 = sld [smem:[#allocation52_spill]]  ;;  %s3425_s24 = sld [smem:[#allocation53_spill]] }
  0xf3   : > { %v289_v7 = vmul.f32 %v3392_v10, %v261_v28  ;;  %v2303_v22 = vmul.f32 %v3394_v8, %v263_v20  ;;  %v3396_v44 = vmov %v3394_v8  ;;  %v2309_v47 = vmul.f32 %v3397_v56, %v263_v20 }
  0xf4   : > { %v279_v17 = vmul.f32 %v3396_v44, %v261_v28  ;;  %v3398_v59 = vmov %v3397_v56  ;;  %v3399_v13 = vstv %s3383_s6  ;;  %v2319_v10 = vadd.f32 %v339_v0, %v288_v41  ;;  %s3430_s6 = sld [smem:[#allocation58_spill]] }
  0xf5   : > { %v2313_v18 = vmul.f32 %v3398_v59, %v261_v28  ;;  %v2317_v35 = vmul.f32 %v3399_v13, %v263_v20  ;;  %v2321_v39 = vadd.f32 %v340_v46, %v289_v7  ;;  %v559_v8 = vsel %vm557_vm11, %v556_v58, %v554_v38 }
  0xf6   : > { %3400 = vst [vmem:[#allocation111_spill] sm:$0xff] %v2319_v10  ;;  %v2327_v44 = vsel %vm557_vm11, %v554_v38, %v556_v58  ;;  %v2331_v56 = vsel %vm253_vm12, %v559_v8, 0.0  ;;  %v327_v0 = vadd.f32 %v2098_v2, %v274_v23  ;;  %v326_v46 = vadd.f32 %v2111_v61, %v273_v42  ;;  %v675_v8 = vpop.permute.xlu1 %674  ;;  %v673_v23 = vpop.permute.xlu0 %672 }
  0xf7   : > { %3402 = vst [vmem:[#allocation112_spill] sm:$0xff] %v2321_v39  ;;  %v3405_v41 = vmov %v3399_v13  ;;  %v3406_v59 = vstv %s3393_s5  ;;  %v3409_v58 = vstv %s3395_s21  ;;  %v676_v61 = vsel %vm260_vm8, %v673_v23, %v675_v8  ;;  %s3434_s5 = sld [smem:[#allocation55_spill]]  ;;  %s3435_s21 = sld [smem:[#allocation56_spill]] }
  0xf8   : > { %v2337_v7 = vmul.f32 %v3405_v41, %v261_v28  ;;  %v2341_v13 = vmul.f32 %v3406_v59, %v263_v20  ;;  %v3408_v39 = vmov %v3406_v59  ;;  %v2349_v10 = vmul.f32 %v3409_v58, %v263_v20 }
  0xf9   : > { %v2345_v38 = vmul.f32 %v3408_v39, %v261_v28  ;;  %v3412_v2 = vmov %v3409_v58  ;;  %v677_v41 = vsel %vm260_vm8, %v675_v8, %v673_v23  ;;  %v3415_v39 = vstv %s3401_s10  ;;  %s3440_s10 = sld [smem:[#allocation57_spill]] }
  0xfa   : > { %3407 = vst [vmem:[#allocation113_spill] sm:$0xff] %v2341_v13  ;;  %3410 = vst [vmem:[#allocation114_spill] sm:$0xff] %v2349_v10  ;;  %v2353_v42 = vmul.f32 %v3412_v2, %v261_v28  ;;  %v520_v59 = vmul.f32 %v3415_v39, %v2295_v52  ;;  %v678_v20 = vsel %vm232_vm9, %v677_v41, 0.0  ;;  %v3417_v58 = vstv %s3403_s2  ;;  %s3444_s2 = sld [smem:[#allocation59_spill]] }
  0xfb   : > { %v2367_v10 = vmul.f32 %v3417_v58, %v2331_v56  ;;  %v3418_v28 = vmov %v3415_v39  ;;  %v3419_v1 = vmov %v3417_v58  ;;  %v3421_v23 = vstv %s3404_s18  ;;  %s3447_s18 = sld [smem:[#allocation60_spill]] }
  0xfc   : > { %3414 = vst [vmem:[#allocation115_spill] sm:$0xff] %v2353_v42  ;;  %v519_v2 = vmul.f32 %v3418_v28, %v2291_v62  ;;  %v2375_v8 = vmul.f32 %v3419_v1, %v2327_v44  ;;  %v2379_v39 = vmul.f32 %v3421_v23, %v676_v61  ;;  %v378_v41 = vadd.f32 %v2165_v33, %v327_v0  ;;  %v723_v33 = vpop.permute.xlu0 %722 }
  0xfd   : > { %v377_v4 = vadd.f32 %v375_v54, %v326_v46  ;;  %v332_v58 = vadd.f32 %v2102_v55, %v279_v17  ;;  %v3424_v36 = vmov %v3421_v23  ;;  %v3427_v28 = vstv %s3411_s28  ;;  %v725_v54 = vpop.permute.xlu1 %724  ;;  %s3461_s28 = sld [smem:[#allocation61_spill]] }
  0xfe   : > { %3422 = vst [vmem:[#allocation116_spill] sm:$0xff] %v2379_v39  ;;  %v2385_v42 = vmul.f32 %v3424_v36, %v678_v20  ;;  %v2389_v50 = vmul.f32 %v3427_v28, %v678_v20  ;;  %v3429_v1 = vmov %v3427_v28  ;;  %v3432_v23 = vstv %s3413_s9  ;;  %s3473_s9 = sld [smem:[#allocation54_spill]] }
  0xff   : > { %v2393_v37 = vmul.f32 %v3429_v1, %v676_v61  ;;  %v2397_v39 = vmul.f32 %v3432_v23, %v676_v61  ;;  %v3436_v55 = vmov %v3432_v23  ;;  %v3438_v36 = vstv %s3416_s29  ;;  %s3476_s29 = sld [smem:[#allocation69_spill]] }
 0x100   : > { %3426 = vst [vmem:[#allocation117_spill] sm:$0xff] %v2385_v42  ;;  %3428 = vst [vmem:[#allocation118_spill] sm:$0xff] %v2389_v50  ;;  %v2401_v17 = vmul.f32 %v3436_v55, %v678_v20  ;;  %v703_v0 = vmul.f32 %v3438_v36, %v678_v20  ;;  %v3439_v46 = vmov %v3438_v36  ;;  %v726_v1 = vsel %vm311_vm1, %v723_v33, %v725_v54 }
 0x101   : > { %3431 = vst [vmem:[#allocation119_spill] sm:$0xff] %v2393_v37  ;;  %3433 = vst [vmem:[#allocation120_spill] sm:$0xff] %v2397_v39  ;;  %v704_v28 = vmul.f32 %v3439_v46, %v676_v61  ;;  %v3441_v50 = vstv %s3420_s20  ;;  %v3446_v42 = vstv %s3423_s17  ;;  %v727_v55 = vsel %vm311_vm1, %v725_v54, %v723_v33  ;;  %s3482_s20 = sld [smem:[#allocation64_spill]]  ;;  %s1518_s17 = smov 3  }
 0x102   : > { %3437 = vst [vmem:[#allocation121_spill] sm:$0xff] %v2401_v17  ;;  %v2411_v37 = vmul.f32 %v3441_v50, %v678_v20  ;;  %v3443_v23 = vmov %v3441_v50  ;;  %v2419_v14 = vmul.f32 %v3446_v42, %v678_v20  ;;  %v3449_v36 = vmov %v3446_v42 }
 0x103   : > { %v2415_v39 = vmul.f32 %v3443_v23, %v676_v61  ;;  %v2425_v46 = vmul.f32 %v3449_v36, %v676_v61  ;;  %v3451_v17 = vstv %s3425_s24  ;;  %v728_v50 = vsel %vm236_vm2, %v727_v55, 0.0  ;;  %v773_v55 = vpop.permute.xlu0 %772  ;;  %s3487_s24 = sld [smem:[#allocation67_spill]] }
 0x104   : > { %3442 = vst [vmem:[#allocation122_spill] sm:$0xff] %v2411_v37  ;;  %3448 = vst [vmem:[#allocation124_spill] sm:$0xff] %v2419_v14  ;;  %v2429_v27 = vmul.f32 %v3451_v17, %v678_v20  ;;  %v3453_v23 = vstv %s3430_s6  ;;  %v3456_v14 = vstv %s3434_s5  ;;  %v3458_v54 = vstv %s3435_s21  ;;  %s1519_s6 = smov 2  }
 0x105   : > { %3445 = vst [vmem:[#allocation123_spill] sm:$0xff] %v2415_v39  ;;  %3450 = vst [vmem:[#allocation125_spill] sm:$0xff] %v2425_v46  ;;  %v754_v37 = vmul.f32 %v3453_v23, %v726_v1  ;;  %v3454_v39 = vmov %v3451_v17  ;;  %v2441_v13 = vmul.f32 %v3456_v14, %v726_v1  ;;  %v2445_v33 = vmul.f32 %v3458_v54, %v726_v1  ;;  %v775_v17 = vpop.permute.xlu1 %774 }
 0x106   : > { %3452 = vst [vmem:[#allocation126_spill] sm:$0xff] %v2429_v27  ;;  %v2437_v42 = vmul.f32 %v3454_v39, %v676_v61  ;;  %v3460_v36 = vmov %v3453_v23  ;;  %v3462_v27 = vstv %s3440_s10  ;;  %v3465_v61 = vstv %s3444_s2  ;;  %s3513_s2 = sld [smem:[#allocation75_spill]] }
 0x107   : > { %3457 = vst [vmem:[#allocation128_spill] sm:$0xff] %v2441_v13  ;;  %3459 = vst [vmem:[#allocation129_spill] sm:$0xff] %v2445_v33  ;;  %v753_v20 = vmul.f32 %v3460_v36, %v728_v50  ;;  %v2451_v46 = vmul.f32 %v3462_v27, %v726_v1  ;;  %v2453_v23 = vadd.f32 %v754_v37, %v704_v28  ;;  %v3467_v14 = vstv %s3447_s18 }
 0x108   : > { %3455 = vst [vmem:[#allocation127_spill] sm:$0xff] %v2437_v42  ;;  %v2457_v39 = vmul.f32 %v3465_v61, %v726_v1  ;;  %v2461_v42 = vmul.f32 %v3467_v14, %v726_v1  ;;  %v3469_v54 = vstv %s3434_s5  ;;  %v3470_v13 = vstv %s3435_s21  ;;  %s3495_s5 = sld [smem:[#allocation73_spill]]  ;;  %s1520_s21 = smov 1  }
 0x109   : > { %3463 = vst [vmem:[#allocation130_spill] sm:$0xff] %v2451_v46  ;;  %3464 = vst [vmem:[#allocation131_spill] sm:$0xff] %v2453_v23  ;;  %v2465_v33 = vmul.f32 %v3469_v54, %v728_v50  ;;  %v2469_v36 = vmul.f32 %v3470_v13, %v728_v50  ;;  %v2471_v63 = vadd.f32 %v753_v20, %v703_v0  ;;  %v3472_v46 = vstv %s3440_s10  ;;  %s3511_s10 = sld [smem:[#allocation74_spill]] }
 0x10a   : > { %3466 = vst [vmem:[#allocation132_spill] sm:$0xff] %v2457_v39  ;;  %3468 = vst [vmem:[#allocation133_spill] sm:$0xff] %v2461_v42  ;;  %v777_v27 = vsel %vm362_vm3, %v775_v17, %v773_v55  ;;  %v2477_v37 = vmul.f32 %v3472_v46, %v728_v50  ;;  %v3475_v28 = vmov %v3465_v61  ;;  %v420_v14 = vadd.f32 %v1875_v51, %v378_v41  ;;  %v867_v39 = vpop.permute.xlu1 %866  ;;  %v865_v46 = vpop.permute.xlu0 %864 }
 0x10b   : > { %3471 = vst [vmem:[#allocation134_spill] sm:$0xff] %v2471_v63  ;;  %v2481_v61 = vmul.f32 %v3475_v28, %v728_v50  ;;  %v419_v54 = vadd.f32 %v1912_v6, %v377_v4  ;;  %v3477_v23 = vstv %s3447_s18  ;;  %v3478_v0 = vstv %s3461_s28  ;;  %s1521_s18 = smov 127   ;;  %s3524_s28 = sld [smem:[#allocation76_spill]] }
 0x10c   : > { %3474 = vst [vmem:[#allocation135_spill] sm:$0xff] %v2477_v37  ;;  %v2487_v13 = vmul.f32 %v3477_v23, %v728_v50  ;;  %v2491_v20 = vmul.f32 %v3478_v0, %v728_v50  ;;  %v3479_v63 = vmov %v3478_v0  ;;  %v383_v37 = vadd.f32 %v2170_v24, %v332_v58 }
 0x10d   : > { %v2495_v42 = vmul.f32 %v3479_v63, %v726_v1  ;;  %v2500_v28 = vsel %vm362_vm3, %v773_v55, %v775_v17  ;;  %v2504_v51 = vsel %vm240_vm4, %v777_v27, 0.0  ;;  %v471_v4 = vadd.f32 %v2228_v29, %v420_v14 }
 0x10e   : > { %v470_v6 = vadd.f32 %v2208_v16, %v419_v54  ;;  %v425_v63 = vadd.f32 %v1927_v11, %v383_v37  ;;  %v3480_v41 = vstv %s3473_s9  ;;  %v3481_v24 = vstv %s3476_s29  ;;  %s2896_s9 = sld [smem:[#allocation2 + $0x26]]  ;;  %s2899_s29 = sld [smem:[#allocation2 + $0x2d]] }
 0x10f   : > { %v525_v1 = vmul.f32 %v3480_v41, %v2295_v52  ;;  %v576_v58 = vmul.f32 %v3481_v24, %v2331_v56  ;;  %v331_v50 = vadd.f32 %v2115_v60, %v2303_v22  ;;  %v522_v17 = vadd.f32 %v520_v59, %v471_v4  ;;  %v917_v22 = vpop.permute.xlu1 %916  ;;  %v915_v59 = vpop.permute.xlu0 %914 }
 0x110   : > { %v521_v55 = vadd.f32 %v519_v2, %v470_v6  ;;  %v2519_v29 = vsel %vm455_vm5, %v865_v46, %v867_v39  ;;  %v337_v11 = vadd.f32 %v2106_v48, %v2313_v18  ;;  %v869_v16 = vsel %vm455_vm5, %v867_v39, %v865_v46 }
 0x111   : > { %v476_v23 = vadd.f32 %v2233_v3, %v425_v63  ;;  %v382_v27 = vadd.f32 %v2198_v49, %v331_v50  ;;  %v3483_v37 = vmov %v3480_v41  ;;  %v573_v2 = vadd.f32 %v2367_v10, %v522_v17 }
 0x112   : > { %v524_v60 = vmul.f32 %v3483_v37, %v2291_v62  ;;  %v572_v14 = vadd.f32 %v2375_v8, %v521_v55  ;;  %v3484_v54 = vmov %v3481_v24  ;;  %v919_v18 = vsel %vm506_vm7, %v917_v22, %v915_v59 }
 0x113   : > { %v575_v48 = vmul.f32 %v3484_v54, %v2327_v44  ;;  %v527_v39 = vadd.f32 %v525_v1, %v476_v23  ;;  %v424_v3 = vadd.f32 %v1930_v12, %v382_v27  ;;  %v388_v49 = vadd.f32 %v2181_v25, %v337_v11  ;;  %606 = vrot.lane.b32.xlu1 %v573_v2, %s1518_s17  ;;  %v967_v1 = vpop.permute.xlu1 %966  ;;  %v965_v24 = vpop.permute.xlu0 %964  ;;  %v3493_v54 = vld [vmem:[#allocation106_spill] sm:$0xff] }
 0x114   : > { %v3485_v0 = vstv %s3482_s20  ;;  %604 = vrot.lane.b32.xlu0 %v572_v14, %s1518_s17  ;;  %v2546_v10 = vsel %vm245_vm6, %v869_v16, 0.0  ;;  %v2550_v8 = vsel %vm506_vm7, %v915_v59, %v917_v22  ;;  %v3486_v12 = vstv %s3316_s7  ;;  %s3492_s7 = sld [smem:[#allocation70_spill]]  ;;  %s3628_s20 = sld [smem:[#allocation15_spill]] }
 0x115   : > { %v530_v46 = vmul.f32 %v3485_v0, %v2295_v52  ;;  %v581_v25 = vmul.f32 %v3486_v12, %v2331_v56  ;;  %v336_v4 = vadd.f32 %v2119_v45, %v2309_v47  ;;  %v475_v6 = vadd.f32 %v2238_v5, %v424_v3 }
 0x116   : > { %v2560_v63 = vsel %vm249_vm10, %v919_v18, 0.0  ;;  %v430_v41 = vadd.f32 %v1947_v21, %v388_v49  ;;  %v347_v50 = vadd.f32 %v2138_v34, %v2337_v7  ;;  %v578_v17 = vadd.f32 %v576_v58, %v527_v39  ;;  %v3496_v39 = vld [vmem:[#allocation113_spill] sm:$0xff] }
 0x117   : > { %v387_v55 = vadd.f32 %v2213_v53, %v336_v4  ;;  %v3488_v11 = vmov %v3485_v0  ;;  %v969_v5 = vsel %vm557_vm11, %v967_v1, %v965_v24  ;;  %v526_v47 = vadd.f32 %v524_v60, %v475_v6  ;;  %v3498_v0 = vld [vmem:[#allocation77_spill] sm:$0xff] }
 0x118   : > { %v529_v45 = vmul.f32 %v3488_v11, %v2291_v62  ;;  %v481_v16 = vadd.f32 %v2256_v57, %v430_v41  ;;  %v3489_v21 = vmov %v3486_v12  ;;  %v398_v27 = vadd.f32 %v2186_v19, %v347_v50  ;;  %617 = vrot.lane.b32.xlu1 %v578_v17, %s1519_s6  ;;  %v3502_v41 = vld [vmem:[#allocation105_spill] sm:$0xff]  ;;  %v3505_v11 = vld [vmem:[#allocation107_spill] sm:$0xff] }
 0x119   : > { %v580_v23 = vmul.f32 %v3489_v21, %v2327_v44  ;;  %v429_v34 = vadd.f32 %v1958_v26, %v387_v55  ;;  %v2580_v53 = vsel %vm557_vm11, %v965_v24, %v967_v1  ;;  %v3490_v7 = vstv %s3487_s24  ;;  %v3503_v24 = vld [vmem:[#allocation115_spill] sm:$0xff]  ;;  %v3504_v50 = vld [vmem:[#allocation101_spill] sm:$0xff]  ;;  %s3630_s24 = sld [smem:[#allocation21_spill]] }
 0x11a   : > { %v540_v58 = vmul.f32 %v3490_v7, %v2295_v52  ;;  %v346_v57 = vadd.f32 %v2132_v32, %v2317_v35  ;;  %v577_v37 = vadd.f32 %v575_v48, %v526_v47  ;;  %v532_v60 = vadd.f32 %v530_v46, %v481_v16 }
 0x11b   : > { %v2589_v19 = vsel %vm253_vm12, %v969_v5, 0.0  ;;  %v440_v22 = vadd.f32 %v1969_v30, %v398_v27  ;;  %v480_v26 = vadd.f32 %v2243_v9, %v429_v34  ;;  %v3491_v59 = vstv %s3319_s26  ;;  %v3497_v9 = vld [vmem:[#allocation98_spill] sm:$0xff]  ;;  %v3506_v5 = vld [vmem:[#allocation78_spill] sm:$0xff]  ;;  %s3507_s26 = sld [smem:[#allocation71_spill]] }
 0x11c   : > { %v591_v2 = vmul.f32 %v3491_v59, %v2331_v56  ;;  %v397_v14 = vadd.f32 %v2218_v15, %v346_v57  ;;  %v352_v32 = vadd.f32 %v2146_v43, %v2345_v38  ;;  %615 = vrot.lane.b32.xlu0 %v577_v37, %s1519_s6  ;;  %v583_v35 = vadd.f32 %v581_v25, %v532_v60  ;;  %v3500_v43 = vld [vmem:[#allocation104_spill] sm:$0xff]  ;;  %v3509_v34 = vld [vmem:[#allocation79_spill] sm:$0xff] }
 0x11d   : > { %v491_v48 = vadd.f32 %v3493_v54, %v440_v22  ;;  %v3494_v18 = vmov %v3490_v7  ;;  %v351_v3 = vadd.f32 %v3497_v9, %v3496_v39  ;;  %v531_v49 = vadd.f32 %v529_v45, %v480_v26  ;;  %v3512_v37 = vld [vmem:[#allocation110_spill] sm:$0xff]  ;;  %v3514_v22 = vld [vmem:[#allocation108_spill] sm:$0xff]  ;;  %v3518_v54 = vld [vmem:[#allocation109_spill] sm:$0xff] }
 0x11e   : > { %v539_v30 = vmul.f32 %v3494_v18, %v2291_v62  ;;  %v439_v46 = vadd.f32 %v3498_v0, %v397_v14  ;;  %v3499_v15 = vmov %v3491_v59  ;;  %v403_v38 = vadd.f32 %v3500_v43, %v352_v32  ;;  %628 = vrot.lane.b32.xlu1 %v583_v35, %s1520_s21  ;;  %v3516_v32 = vld [vmem:[#allocation114_spill] sm:$0xff]  ;;  %v3517_v35 = vld [vmem:[#allocation100_spill] sm:$0xff]  ;;  %v3519_v18 = vld [vmem:[#allocation80_spill] sm:$0xff] }
 0x11f   : > { %v590_v12 = vmul.f32 %v3499_v15, %v2327_v44  ;;  %v542_v25 = vadd.f32 %v540_v58, %v491_v48  ;;  %v3501_v4 = vstv %s3492_s7  ;;  %v402_v1 = vadd.f32 %v3502_v41, %v351_v3  ;;  %v3520_v9 = vld [vmem:[#allocation103_spill] sm:$0xff]  ;;  %s1315_s7 = sshll.u32 %s3628_s20, 7 }
 0x120   : > { %v545_v6 = vmul.f32 %v3501_v4, %v2295_v52  ;;  %v357_v17 = vadd.f32 %v3504_v50, %v3503_v24  ;;  %v582_v55 = vadd.f32 %v580_v23, %v531_v49  ;;  %v490_v45 = vadd.f32 %v3505_v11, %v439_v46  ;;  %v3522_v49 = vld [vmem:[#allocation99_spill] sm:$0xff] }
 0x121   : > { %v445_v47 = vadd.f32 %v3506_v5, %v403_v38  ;;  %v3508_v16 = vstv %s3495_s5  ;;  %v593_v27 = vadd.f32 %v591_v2, %v542_v25  ;;  %v444_v7 = vadd.f32 %v3509_v34, %v402_v1  ;;  %v3529_v5 = vld [vmem:[#allocation102_spill] sm:$0xff] }
 0x122   : > { %v596_v21 = vmul.f32 %v3508_v16, %v2331_v56  ;;  %v3510_v58 = vmov %v3501_v4  ;;  %v408_v60 = vadd.f32 %v3512_v37, %v357_v17  ;;  %626 = vrot.lane.b32.xlu0 %v582_v55, %s1520_s21  ;;  %v541_v23 = vadd.f32 %v539_v30, %v490_v45  ;;  %v3527_v17 = vld [vmem:[#allocation116_spill] sm:$0xff] }
 0x123   : > { %v544_v57 = vmul.f32 %v3510_v58, %v2291_v62  ;;  %v496_v26 = vadd.f32 %v3514_v22, %v445_v47  ;;  %v3515_v59 = vmov %v3508_v16  ;;  %v356_v2 = vadd.f32 %v3517_v35, %v3516_v32  ;;  %641 = vrot.lane.b32.xlu1 %v593_v27, %s1521_s18  ;;  %v3528_v55 = vld [vmem:[#allocation128_spill] sm:$0xff] }
 0x124   : > { %v595_v14 = vmul.f32 %v3515_v59, %v2327_v44  ;;  %v495_v48 = vadd.f32 %v3518_v54, %v444_v7  ;;  %v450_v39 = vadd.f32 %v3519_v18, %v408_v60  ;;  %v3521_v30 = vstv %s3507_s26  ;;  %v3533_v58 = vld [vmem:[#allocation81_spill] sm:$0xff]  ;;  %v3536_v59 = vld [vmem:[#allocation117_spill] sm:$0xff] }
 0x125   : > { %v499_v3 = vmul.f32 %v3521_v30, %v3520_v9  ;;  %v3523_v0 = vstv %s1838_s12  ;;  %v592_v15 = vadd.f32 %v590_v12, %v541_v23  ;;  %v547_v43 = vadd.f32 %v545_v6, %v496_v26  ;;  %s1522_s12 = smov 126  }
 0x126   : > { %v405_v46 = vmul.f32 %v3523_v0, %v3522_v49  ;;  %v3525_v38 = vstv %s3511_s10  ;;  %v3526_v4 = vstv %s3513_s2  ;;  %v546_v1 = vadd.f32 %v544_v57, %v495_v48  ;;  %v3540_v0 = vld [vmem:[#allocation82_spill] sm:$0xff] }
 0x127   : > { %v550_v25 = vmul.f32 %v3525_v38, %v2295_v52  ;;  %v601_v41 = vmul.f32 %v3526_v4, %v2331_v56  ;;  %v501_v24 = vadd.f32 %v499_v3, %v450_v39  ;;  %v741_v11 = vadd.f32 %v3528_v55, %v3527_v17  ;;  %639 = vrot.lane.b32.xlu0 %v592_v15, %s1521_s18  ;;  %v3541_v15 = vld [vmem:[#allocation119_spill] sm:$0xff] }
 0x128   : > { %v407_v50 = vadd.f32 %v405_v46, %v356_v2  ;;  %v598_v45 = vadd.f32 %v596_v21, %v547_v43  ;;  %v3530_v12 = vmov %v3521_v30  ;;  %v3531_v47 = vmov %v3525_v38 }
 0x129   : > { %v498_v6 = vmul.f32 %v3530_v12, %v3529_v5  ;;  %v549_v16 = vmul.f32 %v3531_v47, %v2291_v62  ;;  %v3532_v27 = vstv %s1890_s1  ;;  %v552_v7 = vadd.f32 %v550_v25, %v501_v24  ;;  %s1523_s1 = smov 125   ;;  %v3548_v47 = vld [vmem:[#allocation118_spill] sm:$0xff] }
 0x12a   : > { %v789_v34 = vmul.f32 %v3532_v27, %v2500_v28  ;;  %v449_v57 = vadd.f32 %v3533_v58, %v407_v50  ;;  %v3534_v37 = vmov %v3526_v4  ;;  %v3535_v23 = vstv %s3524_s28  ;;  %652 = vrot.lane.b32.xlu1 %v598_v45, %s1522_s12  ;;  %v3547_v45 = vld [vmem:[#allocation85_spill] sm:$0xff] }
 0x12b   : > { %v600_v60 = vmul.f32 %v3534_v37, %v2327_v44  ;;  %v881_v21 = vmul.f32 %v3535_v23, %v2546_v10  ;;  %v597_v22 = vadd.f32 %v595_v14, %v546_v1  ;;  %v740_v32 = vadd.f32 %v2465_v33, %v3536_v59  ;;  %v3542_v33 = vld [vmem:[#allocation129_spill] sm:$0xff] }
 0x12c   : > { %v791_v26 = vadd.f32 %v789_v34, %v741_v11  ;;  %v3537_v35 = vmov %v3532_v27  ;;  %v603_v54 = vadd.f32 %v601_v41, %v552_v7  ;;  %v500_v48 = vadd.f32 %v498_v6, %v449_v57 }
 0x12d   : > { %v788_v2 = vmul.f32 %v3537_v35, %v2504_v51  ;;  %v3538_v18 = vstv %s1904_s8  ;;  %v3539_v30 = vmov %v3535_v23  ;;  %650 = vrot.lane.b32.xlu0 %v597_v22, %s1522_s12  ;;  %v746_v43 = vadd.f32 %v3542_v33, %v3541_v15  ;;  %v3559_v33 = vld [vmem:[#allocation88_spill] sm:$0xff]  ;;  %s2812_s8 = sld [smem:[#allocation2 + $0x42]] }
 0x12e   : > { %v931_v39 = vmul.f32 %v3538_v18, %v2560_v63  ;;  %v880_v3 = vmul.f32 %v3539_v30, %v2519_v29  ;;  %v833_v14 = vadd.f32 %v3540_v0, %v791_v26  ;;  %v3543_v38 = vstv %s1914_s14  ;;  %663 = vrot.lane.b32.xlu1 %v603_v54, %s1523_s1  ;;  %v3552_v26 = vld [vmem:[#allocation87_spill] sm:$0xff]  ;;  %v3555_v54 = vld [vmem:[#allocation120_spill] sm:$0xff]  ;;  %s2833_s14 = sld [smem:[#allocation2 + $0x49]] }
 0x12f   : > { %v790_v46 = vadd.f32 %v788_v2, %v740_v32  ;;  %v794_v25 = vmul.f32 %v3543_v38, %v2500_v28  ;;  %v551_v4 = vadd.f32 %v549_v16, %v500_v48  ;;  %v3544_v41 = vstv %s1906_s3  ;;  %v3556_v48 = vld [vmem:[#allocation130_spill] sm:$0xff]  ;;  %s3593_s3 = sld [smem:[#allocation86_spill]] }
 0x130   : > { %v981_v1 = vmul.f32 %v3544_v41, %v2589_v19  ;;  %v3545_v24 = vmov %v3538_v18  ;;  %v3546_v17 = vstv %s1924_s30  ;;  %v883_v11 = vadd.f32 %v881_v21, %v833_v14  ;;  %s3586_s30 = sld [smem:[#allocation46_spill]] }
 0x131   : > { %v930_v50 = vmul.f32 %v3545_v24, %v2550_v8  ;;  %v886_v55 = vmul.f32 %v3546_v17, %v2546_v10  ;;  %v832_v12 = vadd.f32 %v3547_v45, %v790_v46  ;;  %v796_v6 = vadd.f32 %v794_v25, %v746_v43  ;;  %v3562_v24 = vld [vmem:[#allocation135_spill] sm:$0xff] }
 0x132   : > { %v745_v16 = vadd.f32 %v2469_v36, %v3548_v47  ;;  %v602_v27 = vadd.f32 %v600_v60, %v551_v4  ;;  %v3549_v34 = vmov %v3544_v41  ;;  %v3550_v58 = vstv %s1934_s11  ;;  %v3561_v41 = vld [vmem:[#allocation121_spill] sm:$0xff]  ;;  %s3581_s11 = sld [smem:[#allocation72_spill]] }
 0x133   : > { %v980_v7 = vmul.f32 %v3549_v34, %v2580_v53  ;;  %v936_v57 = vmul.f32 %v3550_v58, %v2560_v63  ;;  %v3551_v37 = vmov %v3543_v38  ;;  %v933_v21 = vadd.f32 %v931_v39, %v883_v11  ;;  %v3565_v47 = vld [vmem:[#allocation89_spill] sm:$0xff] }
 0x134   : > { %v793_v23 = vmul.f32 %v3551_v37, %v2504_v51  ;;  %v882_v22 = vadd.f32 %v880_v3, %v832_v12  ;;  %v838_v59 = vadd.f32 %v3552_v26, %v796_v6  ;;  %v3553_v32 = vstv %s1942_s0  ;;  %661 = vrot.lane.b32.xlu0 %v602_v27, %s1523_s1  ;;  %s3574_s0 = sld [smem:[#allocation65_spill]] }
 0x135   : > { %v986_v35 = vmul.f32 %v3553_v32, %v2589_v19  ;;  %v3554_v60 = vmov %v3546_v17  ;;  %v751_v18 = vadd.f32 %v3556_v48, %v3555_v54  ;;  %v3557_v30 = vstv %s1916_s22  ;;  %s3607_s22 = sld [smem:[#allocation33_spill]] }
 0x136   : > { %v795_v36 = vadd.f32 %v793_v23, %v745_v16  ;;  %v885_v2 = vmul.f32 %v3554_v60, %v2519_v29  ;;  %v799_v39 = vmul.f32 %v3557_v30, %v2500_v28  ;;  %v983_v3 = vadd.f32 %v981_v1, %v933_v21  ;;  %v3568_v23 = vld [vmem:[#allocation123_spill] sm:$0xff]  ;;  %v3569_v21 = vld [vmem:[#allocation132_spill] sm:$0xff] }
 0x137   : > { %v932_v0 = vadd.f32 %v930_v50, %v882_v22  ;;  %v888_v14 = vadd.f32 %v886_v55, %v838_v59  ;;  %v3558_v46 = vmov %v3550_v58  ;;  %v3560_v25 = vstv %s1962_s27  ;;  %s2853_s27 = sld [smem:[#allocation2 + $0x57]] }
 0x138   : > { %v935_v15 = vmul.f32 %v3558_v46, %v2550_v8  ;;  %v837_v43 = vadd.f32 %v3559_v33, %v795_v36  ;;  %v801_v38 = vadd.f32 %v799_v39, %v751_v18  ;;  %v891_v4 = vmul.f32 %v3560_v25, %v2546_v10  ;;  %1016 = vrot.lane.b32.xlu1 %v983_v3, %s1518_s17 }
 0x139   : > { %v750_v17 = vadd.f32 %v3562_v24, %v3561_v41  ;;  %v982_v1 = vadd.f32 %v980_v7, %v932_v0  ;;  %v938_v50 = vadd.f32 %v936_v57, %v888_v14  ;;  %v3563_v55 = vmov %v3553_v32  ;;  %v3576_v0 = vld [vmem:[#allocation122_spill] sm:$0xff]  ;;  %v3579_v41 = vld [vmem:[#allocation91_spill] sm:$0xff] }
 0x13a   : > { %v985_v11 = vmul.f32 %v3563_v55, %v2580_v53  ;;  %v3564_v45 = vmov %v3557_v30  ;;  %v887_v6 = vadd.f32 %v885_v2, %v837_v43  ;;  %v843_v16 = vadd.f32 %v3565_v47, %v801_v38 }
 0x13b   : > { %v798_v12 = vmul.f32 %v3564_v45, %v2504_v51  ;;  %v3566_v27 = vstv %s1973_s19  ;;  %v3567_v58 = vmov %v3560_v25  ;;  %1014 = vrot.lane.b32.xlu0 %v982_v1, %s1518_s17  ;;  %v988_v7 = vadd.f32 %v986_v35, %v938_v50  ;;  %v3573_v35 = vld [vmem:[#allocation90_spill] sm:$0xff]  ;;  %v3583_v45 = vld [vmem:[#allocation125_spill] sm:$0xff]  ;;  %s2850_s19 = sld [smem:[#allocation2 + $0x50]]  ;;  %s3629_s17 = sld [smem:[#allocation20_spill]] }
 0x13c   : > { %v941_v34 = vmul.f32 %v3566_v27, %v2560_v63  ;;  %v890_v37 = vmul.f32 %v3567_v58, %v2519_v29  ;;  %v761_v22 = vadd.f32 %v3569_v21, %v3568_v23  ;;  %v3570_v26 = vstv %s1944_s13  ;;  %s2784_s13 = sld [smem:[#allocation2 + $0x61]]  ;;  %v3589_v23 = vld [vmem:[#allocation92_spill] sm:$0xff] }
 0x13d   : > { %v800_v57 = vadd.f32 %v798_v12, %v750_v17  ;;  %v809_v59 = vmul.f32 %v3570_v26, %v2500_v28  ;;  %v937_v32 = vadd.f32 %v935_v15, %v887_v6  ;;  %v893_v36 = vadd.f32 %v891_v4, %v843_v16  ;;  %1026 = vrot.lane.b32.xlu1 %v988_v7, %s1519_s6  ;;  %v3584_v12 = vld [vmem:[#allocation133_spill] sm:$0xff] }
 0x13e   : > { %v3571_v60 = vstv %s1986_s15  ;;  %v3572_v54 = vmov %v3566_v27  ;;  %v3575_v39 = vstv %s1964_s23  ;;  %v760_v14 = vadd.f32 %v2481_v61, %v3576_v0  ;;  %s3591_s23 = sld [smem:[#allocation83_spill]] }
 0x13f   : > { %v991_v2 = vmul.f32 %v3571_v60, %v2589_v19  ;;  %v940_v48 = vmul.f32 %v3572_v54, %v2550_v8  ;;  %v842_v18 = vadd.f32 %v3573_v35, %v800_v57  ;;  %v811_v30 = vadd.f32 %v809_v59, %v761_v22  ;;  %s1303_s15 = sld [smem:[#allocation2 + $0x5e]] }
 0x140   : > { %v901_v3 = vmul.f32 %v3575_v39, %v2546_v10  ;;  %v987_v46 = vadd.f32 %v985_v11, %v937_v32  ;;  %v943_v15 = vadd.f32 %v941_v34, %v893_v36  ;;  %v3577_v33 = vmov %v3571_v60  ;;  %v3592_v32 = vld [vmem:[#allocation124_spill] sm:$0xff] }
 0x141   : > { %v990_v43 = vmul.f32 %v3577_v33, %v2580_v53  ;;  %v3578_v38 = vmov %v3570_v26  ;;  %v892_v4 = vadd.f32 %v890_v37, %v842_v18  ;;  %v853_v24 = vadd.f32 %v3579_v41, %v811_v30  ;;  %s3633_s5 = sshll.u32 %s3629_s17, 3 }
 0x142   : > { %v808_v25 = vmul.f32 %v3578_v38, %v2504_v51  ;;  %v3580_v17 = vstv %s1998_s4  ;;  %v3582_v50 = vmov %v3575_v39  ;;  %1024 = vrot.lane.b32.xlu0 %v987_v46, %s1519_s6  ;;  %v993_v55 = vadd.f32 %v991_v2, %v943_v15  ;;  %v3596_v39 = vld [vmem:[#allocation93_spill] sm:$0xff]  ;;  %s3598_s4 = sld [smem:[#allocation84_spill]]  ;;  %s3632_s6 = sld [smem:[#allocation19_spill]] }
 0x143   : > { %v951_v1 = vmul.f32 %v3580_v17, %v2560_v63  ;;  %v900_v61 = vmul.f32 %v3582_v50, %v2519_v29  ;;  %v766_v6 = vadd.f32 %v3584_v12, %v3583_v45  ;;  %v3585_v47 = vstv %s3574_s0  ;;  %s1524_s0 = smov [#allocation7]  }
 0x144   : > { %v810_v11 = vadd.f32 %v808_v25, %v760_v14  ;;  %v814_v16 = vmul.f32 %v3585_v47, %v2500_v28  ;;  %v942_v27 = vadd.f32 %v940_v48, %v892_v4  ;;  %v903_v34 = vadd.f32 %v901_v3, %v853_v24  ;;  %1036 = vrot.lane.b32.xlu1 %v993_v55, %s1520_s21  ;;  %v3604_v55 = vld [vmem:[#allocation94_spill] sm:$0xff] }
 0x145   : > { %v3587_v58 = vstv %s2027_s25  ;;  %v3588_v7 = vmov %v3580_v17  ;;  %v3590_v26 = vstv %s3581_s11  ;;  %v765_v36 = vadd.f32 %v2487_v13, %v3592_v32  ;;  %s1233_s25 = sld [smem:[#allocation2 + $0x18]]  ;;  %s1442_s11 = sshll.u32 %s1524_s0, 4  ;;  %s1443_s11 = int_to_ptr.vmem [resolvable:$false] %s1442_s11 }
 0x146   : > { %v1001_v37 = vmul.f32 %v3587_v58, %v2589_v19  ;;  %v950_v57 = vmul.f32 %v3588_v7, %v2550_v8  ;;  %v852_v21 = vadd.f32 %v3589_v23, %v810_v11  ;;  %v816_v22 = vadd.f32 %v814_v16, %v766_v6  ;;  %v3606_v6 = vld [vmem:[#allocation126_spill] sm:$0xff] }
 0x147   : > { %v906_v59 = vmul.f32 %v3590_v26, %v2546_v10  ;;  %v992_v60 = vadd.f32 %v990_v43, %v942_v27  ;;  %v953_v2 = vadd.f32 %v951_v1, %v903_v34  ;;  %v3594_v54 = vmov %v3587_v58  ;;  %v3600_v43 = vld [vmem:[#allocation127_spill] sm:$0xff] }
 0x148   : > { %v1000_v48 = vmul.f32 %v3594_v54, %v2580_v53  ;;  %v3595_v35 = vmov %v3585_v47  ;;  %v902_v30 = vadd.f32 %v900_v61, %v852_v21  ;;  %v858_v3 = vadd.f32 %v3596_v39, %v816_v22  ;;  %v3610_v21 = vld [vmem:[#allocation95_spill] sm:$0xff]  ;;  %p3635_p9 = scmp.ne.s32.totalorder %s3632_s6, 0 }
 0x149   : > { %v813_v18 = vmul.f32 %v3595_v35, %v2504_v51  ;;  %v3597_v0 = vstv %s3586_s30  ;;  %v3599_v46 = vmov %v3590_v26  ;;  %1034 = vrot.lane.b32.xlu0 %v992_v60, %s1520_s21  ;;  %v1003_v15 = vadd.f32 %v1001_v37, %v953_v2  ;;  %s171_s21 = scalar_lea.vmem [#allocation7], %s3633_s5 }
 0x14a   : > { %v956_v14 = vmul.f32 %v3597_v0, %v2560_v63  ;;  %v905_v13 = vmul.f32 %v3599_v46, %v2519_v29  ;;  %v771_v38 = vadd.f32 %v2495_v42, %v3600_v43  ;;  %v3601_v25 = vstv %s3591_s23  ;;  %s1117_s26 = sshll.u32 %s171_s21, 4  ;;  %s3044_s26 = int_to_ptr.vmem [resolvable:$true] %s1117_s26 }
 0x14b   : > { %v815_v33 = vadd.f32 %v813_v18, %v765_v36  ;;  %v819_v4 = vmul.f32 %v3601_v25, %v2500_v28  ;;  %v952_v41 = vadd.f32 %v950_v57, %v902_v30  ;;  %v908_v24 = vadd.f32 %v906_v59, %v858_v3  ;;  %1048 = vrot.lane.b32.xlu1 %v1003_v15, %s1521_s18  ;;  %v3614_v30 = vld [vmem:[#allocation96_spill] sm:$0xff]  ;;  %p1445_p1 = scmp.lt.s32.totalorder %s3044_s26, %s1443_s11 }
 0x14c   : > { %v3602_v17 = vstv %s3593_s3  ;;  %v3603_v50 = vmov %v3597_v0  ;;  %v3605_v42 = vstv %s3598_s4  ;;  %v770_v47 = vadd.f32 %v2491_v20, %v3606_v6 }
 0x14d   : > { %v1006_v1 = vmul.f32 %v3602_v17, %v2589_v19  ;;  %v955_v61 = vmul.f32 %v3603_v50, %v2550_v8  ;;  %v857_v11 = vadd.f32 %v3604_v55, %v815_v33  ;;  %v821_v45 = vadd.f32 %v819_v4, %v771_v38 }
 0x14e   : > { %v911_v12 = vmul.f32 %v3605_v42, %v2546_v10  ;;  %v1002_v16 = vadd.f32 %v1000_v48, %v952_v41  ;;  %v958_v27 = vadd.f32 %v956_v14, %v908_v24  ;;  %v1009_v34 = vstv %s2784_s13  ;;  %v3616_v14 = vld [vmem:[#allocation97_spill] sm:$0xff]  ;;  %v3619_v24 = vld [vmem:[#allocation112_spill] sm:$0xff]  ;;  %s1444_s13 = scalar_lea.vmem %s1443_s11, 256 }
 0x14f   : > { %v3608_v58 = vmov %v3601_v25  ;;  %v907_v7 = vadd.f32 %v905_v13, %v857_v11  ;;  %v3609_v57 = vmov %v3602_v17  ;;  %v863_v22 = vadd.f32 %v3610_v21, %v821_v45  ;;  %v3620_v45 = vld [vmem:[#allocation25_spill] sm:$0xff] }
 0x150   : > { %v818_v37 = vmul.f32 %v3608_v58, %v2504_v51  ;;  %v1005_v23 = vmul.f32 %v3609_v57, %v2580_v53  ;;  %v3611_v26 = vstv %s2040_s16  ;;  %1046 = vrot.lane.b32.xlu0 %v1002_v16, %s1521_s18  ;;  %v1008_v59 = vadd.f32 %v1006_v1, %v958_v27  ;;  %v3622_v27 = vld [vmem:[#allocation134_spill] sm:$0xff]  ;;  %v3623_v58 = vld [vmem:[#allocation131_spill] sm:$0xff]  ;;  %s2894_s16 = sld [smem:[#allocation2 + $0x1f]] }
 0x151   : > { %v961_v20 = vmul.f32 %v3611_v26, %v2560_v63  ;;  %v3612_v36 = vmov %v3605_v42  ;;  %v957_v2 = vadd.f32 %v955_v61, %v907_v7  ;;  %v913_v54 = vadd.f32 %v911_v12, %v863_v22  ;;  %v3621_v12 = vld [vmem:[#allocation24_spill] sm:$0xff]  ;;  %s3634_s18 = sld [smem:[#allocation138_spill]] }
 0x152   : > { %v820_v32 = vadd.f32 %v818_v37, %v770_v47  ;;  %v910_v60 = vmul.f32 %v3612_v36, %v2519_v29  ;;  %v1011_v48 = vmul.f32 %v1009_v34, %v2589_v19  ;;  %v3613_v35 = vstv %s3607_s22  ;;  %1058 = vrot.lane.b32.xlu1 %v1008_v59, %s1522_s12 }
 0x153   : > { %v390_v18 = vmul.f32 %v3613_v35, %v3522_v49  ;;  %v3615_v3 = vmov %v3611_v26  ;;  %v3617_v46 = vmov %v3613_v35  ;;  %v802_v15 = vstv %s2812_s8  ;;  %v3618_v49 = vld [vmem:[#allocation111_spill] sm:$0xff] }
 0x154   : > { %v862_v39 = vadd.f32 %v3614_v30, %v820_v32  ;;  %v960_v0 = vmul.f32 %v3615_v3, %v2550_v8  ;;  %v391_v13 = vmul.f32 %v3617_v46, %v3616_v14  ;;  %v1007_v33 = vadd.f32 %v1005_v23, %v957_v2 }
 0x155   : > { %v963_v43 = vadd.f32 %v961_v20, %v913_v54  ;;  %v1010_v25 = vmul.f32 %v1009_v34, %v2580_v53  ;;  %v2869_v4 = vadd.f32 %v390_v18, %v3618_v49  ;;  %v844_v1 = vstv %s2833_s14 }
 0x156   : > { %v912_v38 = vadd.f32 %v910_v60, %v862_v39  ;;  %1056 = vrot.lane.b32.xlu0 %v1007_v33, %s1522_s12  ;;  %v393_v17 = vadd.f32 %v391_v13, %v3619_v24  ;;  %v803_v50 = vmul.f32 %v802_v15, %v2504_v51  ;;  %v804_v61 = vmul.f32 %v802_v15, %v2500_v28  ;;  %v3625_v33 = vld [vmem:[#allocation22_spill] sm:$0xff]  ;;  %s1103_s12 = scalar_lea.sflag [#allocation4], %s3629_s17 }
 0x157   : > { %v1013_v41 = vadd.f32 %v1011_v48, %v963_v43  ;;  %v845_v42 = vmul.f32 %v844_v1, %v3620_v45  ;;  %v846_v6 = vmul.f32 %v844_v1, %v3621_v12  ;;  %v894_v47 = vstv %s2850_s19  ;;  %s3042_s28 = scalar_lea.hbm %s3634_s18, %s1315_s7 }
 0x158   : > { %v962_v55 = vadd.f32 %v960_v0, %v912_v38  ;;  %v944_v16 = vstv %s2853_s27  ;;  %v805_v34 = vadd.f32 %v803_v50, %v3622_v27  ;;  %v806_v37 = vadd.f32 %v804_v61, %v3623_v58 }
 0x159   : > { %1068 = vrot.lane.b32.xlu1 %v1013_v41, %s1523_s1  ;;  %v895_v51 = vmul.f32 %v894_v47, %v2519_v29  ;;  %v896_v28 = vmul.f32 %v894_v47, %v2546_v10  ;;  %v994_v7 = vstv %s1303_s15  ;;  %v945_v21 = vmul.f32 %v944_v16, %v2550_v8  ;;  %v3624_v8 = vld [vmem:[#allocation23_spill] sm:$0xff] }
 0x15a   : > { %v1012_v11 = vadd.f32 %v1010_v25, %v962_v55  ;;  %v847_v57 = vadd.f32 %v845_v42, %v805_v34  ;;  %v848_v23 = vadd.f32 %v846_v6, %v806_v37  ;;  %v946_v22 = vmul.f32 %v944_v16, %v2560_v63 }
 0x15b   : > { %v995_v59 = vmul.f32 %v994_v7, %v2580_v53  ;;  %v996_v32 = vmul.f32 %v994_v7, %v2589_v19  ;;  %v431_v10 = vstv %s1233_s25  ;;  %v482_v19 = vstv %s2894_s16 }
 0x15c   : > { %1066 = vrot.lane.b32.xlu0 %v1012_v11, %s1523_s1  ;;  %v897_v26 = vadd.f32 %v895_v51, %v847_v57  ;;  %v898_v20 = vadd.f32 %v896_v28, %v848_v23  ;;  %v433_v63 = vmul.f32 %v431_v10, %v3624_v8  ;;  %v2903_v18 = vand.u32 15, %v1850_v40  ;;  %s1438_s1 = scalar_lea.vmem %s3044_s26, 128 }
 0x15d   : > { %v484_v30 = vmul.f32 %v482_v19, %v3520_v9  ;;  %v533_v39 = vstv %s2896_s9  ;;  %v584_v46 = vstv %s2899_s29  ;;  %vm630_vm1 = vcmp.lt.s32.totalorder %v1831_v31, 1  ;;  %p1439_p8 = scmp.ne.s32.totalorder %s3044_s26, %s1438_s1  ;;  %p1446_p2 = scmp.lt.s32.totalorder %s1444_s13, %s1438_s1 }
 0x15e   : > { %v947_v36 = vadd.f32 %v945_v21, %v897_v26  ;;  %v948_v60 = vadd.f32 %v946_v22, %v898_v20  ;;  %v435_v48 = vadd.f32 %v433_v63, %v393_v17  ;;  %vm239_vm15 = vcmp.ge.s32.totalorder %v2903_v18, 2 }
 0x15f   : > { %vm235_vm0 = vcmp.ge.s32.totalorder %v2903_v18, 3  ;;  %v535_v15 = vmul.f32 %v533_v39, %v2295_v52  ;;  %v432_v43 = vmul.f32 %v431_v10, %v3625_v33  ;;  %vm243_vm2 = vcmp.ge.s32.totalorder %v2903_v18, 1  ;;  %p1440_p11 = pnand %p1439_p8, %p3635_p9  ;;  %p1447_p12 = por %p1446_p2, %p1445_p1 }
 0x160   : > { %v2890_v2 = vadd.f32 %v995_v59, %v947_v36  ;;  %v2892_v29 = vadd.f32 %v996_v32, %v948_v60  ;;  %v486_v0 = vadd.f32 %v484_v30, %v435_v48  ;;  %v586_v38 = vmul.f32 %v584_v46, %v2331_v56 }
 0x161   : > { %v2924_v49 = vand.u32 15, %v1831_v31  ;;  %v434_v61 = vadd.f32 %v432_v43, %v2869_v4  ;;  %vm643_vm3 = vcmp.lt.s32.totalorder %v1831_v31, 127  ;;  %vm3214_vm4 = vcmp.lt.s32.totalorder %v2903_v18, 15  ;;  %p1441_p5 = pneg %p1440_p11 }
 0x162   : > { %v537_v25 = vadd.f32 %v535_v15, %v486_v0  ;;  %v483_v11 = vmul.f32 %v482_v19, %v3529_v5  ;;  %vm654_vm8 = vcmp.lt.s32.totalorder %v1831_v31, 126  ;;  %vm3213_vm9 = vcmp.lt.s32.totalorder %v2903_v18, 14 }
 0x163   : > { %vm234_vm5 = vcmp.ge.s32.totalorder %v2924_v49, 3  ;;  %vm238_vm6 = vcmp.ge.s32.totalorder %v2924_v49, 2  ;;  %vm242_vm7 = vcmp.ge.s32.totalorder %v2924_v49, 1  ;;  %v534_v51 = vmul.f32 %v533_v39, %v2291_v62  ;;  %p1448_p0 = pnand %p1447_p12, %p1441_p5 }
 0x164   : > { %v588_v55 = vadd.f32 %v586_v38, %v537_v25  ;;  %v485_v6 = vadd.f32 %v483_v11, %v434_v61  ;;  %v585_v23 = vmul.f32 %v584_v46, %v2327_v44  ;;  %vm665_vm10 = vcmp.lt.s32.totalorder %v1831_v31, 125 }
 0x165   : > { %vm255_vm11 = vcmp.lt.s32.totalorder %v2903_v18, 13  ;;  %vm246_vm12 = vcmp.lt.s32.totalorder %v2924_v49, 15 }
 0x166   : > { %v536_v20 = vadd.f32 %v534_v51, %v485_v6 }
 0x168   : > { %v587_v60 = vadd.f32 %v585_v23, %v536_v20 }
 0x185   : > { %v607_v54 = vpop.permute.xlu1 %606 }
 0x186   : > { %v605_v53 = vpop.permute.xlu0 %604 }
 0x187   : > { %v609_v40 = vsel %vm608_vm14, %v605_v53, %v607_v54  ;;  %v610_v5 = vsel %vm608_vm14, %v607_v54, %v605_v53 }
 0x188   : > { %v612_v41 = vsel %vm235_vm0, %v609_v40, 0.0  ;;  %v611_v7 = vsel %vm234_vm5, %v610_v5, 0.0 }
 0x18a   : > { %v618_v35 = vpop.permute.xlu1 %617 }
 0x18e   : > { %v616_v3 = vpop.permute.xlu0 %615 }
 0x18f   : > { %v620_v14 = vsel %vm619_vm13, %v616_v3, %v618_v35  ;;  %v621_v42 = vsel %vm619_vm13, %v618_v35, %v616_v3 }
 0x190   : > { %v629_v13 = vpop.permute.xlu1 %628  ;;  %v623_v9 = vsel %vm239_vm15, %v620_v14, 0.0  ;;  %v622_v58 = vsel %vm238_vm6, %v621_v42, 0.0 }
 0x191   : > { %v625_v52 = vadd.f32 %v623_v9, %v612_v41  ;;  %v624_v26 = vadd.f32 %v622_v58, %v611_v7 }
 0x194   : > { %v627_v24 = vpop.permute.xlu0 %626 }
 0x195   : > { %v631_v17 = vsel %vm630_vm1, %v627_v24, %v629_v13  ;;  %v642_v1 = vpop.permute.xlu1 %641  ;;  %v632_v27 = vsel %vm630_vm1, %v629_v13, %v627_v24 }
 0x196   : > { %v634_v50 = vsel %vm243_vm2, %v631_v17, 0.0  ;;  %v633_v57 = vsel %vm242_vm7, %v632_v27, 0.0 }
 0x197   : > { %v636_v56 = vadd.f32 %v634_v50, %v625_v52  ;;  %v635_v62 = vadd.f32 %v633_v57, %v624_v26 }
 0x199   : > { %v640_v45 = vpop.permute.xlu0 %639  ;;  %v638_v12 = vadd.f32 %v636_v56, %v588_v55  ;;  %v637_v54 = vadd.f32 %v635_v62, %v587_v60 }
 0x19a   : > { %v645_v4 = vsel %vm643_vm3, %v642_v1, %v640_v45  ;;  %v644_v44 = vsel %vm643_vm3, %v640_v45, %v642_v1 }
 0x19b   : > { %v647_v47 = vsel %vm3214_vm4, %v645_v4, 0.0  ;;  %v646_v19 = vsel %vm246_vm12, %v644_v44, 0.0  ;;  %vm254_vm4 = vcmp.lt.s32.totalorder %v2924_v49, 13 }
 0x19c   : > { %v653_v16 = vpop.permute.xlu1 %652  ;;  %v649_v34 = vadd.f32 %v647_v47, %v638_v12  ;;  %v648_v14 = vadd.f32 %v646_v19, %v637_v54 }
 0x19f   : > { %v651_v37 = vpop.permute.xlu0 %650 }
 0x1a0   : > { %v656_v28 = vsel %vm654_vm8, %v653_v16, %v651_v37  ;;  %v664_v22 = vpop.permute.xlu1 %663  ;;  %v655_v53 = vsel %vm654_vm8, %v651_v37, %v653_v16 }
 0x1a1   : > { %v658_v21 = vsel %vm3213_vm9, %v656_v28, 0.0  ;;  %vm250_vm9 = vcmp.lt.s32.totalorder %v2924_v49, 14  ;;  %v3631_v49 = vlaneseq }
 0x1a2   : > { %v660_v59 = vadd.f32 %v658_v21, %v649_v34  ;;  %v657_v39 = vsel %vm250_vm9, %v655_v53, 0.0 }
 0x1a3   : > { %v659_v15 = vadd.f32 %v657_v39, %v648_v14  ;;  %v1089_v19 = vshrl.u32 %v3631_v49, 7 }
 0x1a6   : > { %v662_v32 = vpop.permute.xlu0 %661 }
 0x1a7   : > { %v667_v36 = vsel %vm665_vm10, %v664_v22, %v662_v32  ;;  %v666_v35 = vsel %vm665_vm10, %v662_v32, %v664_v22 }
 0x1a8   : > { %v669_v10 = vsel %vm255_vm11, %v667_v36, 0.0  ;;  %v668_v13 = vsel %vm254_vm4, %v666_v35, 0.0 }
 0x1a9   : > { %v671_v8 = vadd.f32 %v669_v10, %v660_v59  ;;  %v670_v25 = vadd.f32 %v668_v13, %v659_v15 }
 0x1aa   : > { %v1017_v63 = vpop.permute.xlu1 %1016 }
 0x1ad   : > { %v1015_v48 = vpop.permute.xlu0 %1014 }
 0x1ae   : > { %v1018_v30 = vsel %vm608_vm14, %v1015_v48, %v1017_v63  ;;  %v1019_v46 = vsel %vm608_vm14, %v1017_v63, %v1015_v48  ;;  %vm3627_vm14 = vcmp.lt.s32.totalorder %v2903_v18, 14 }
 0x1af   : > { %v1021_v3 = vsel %vm235_vm0, %v1018_v30, 0.0  ;;  %v1027_v0 = vpop.permute.xlu1 %1026  ;;  %v1020_v33 = vsel %vm234_vm5, %v1019_v46, 0.0 }
 0x1b0   : > { %v1023_v40 = vadd.f32 %v1021_v3, %v671_v8  ;;  %v1022_v1 = vadd.f32 %v1020_v33, %v670_v25 }
 0x1b4   : > { %v1025_v9 = vpop.permute.xlu0 %1024 }
 0x1b5   : > { %v1028_v43 = vsel %vm619_vm13, %v1025_v9, %v1027_v0  ;;  %v1029_v38 = vsel %vm619_vm13, %v1027_v0, %v1025_v9  ;;  %vm3626_vm13 = vcmp.lt.s32.totalorder %v2903_v18, 15  ;;  %v1090_v18 = vsub.s32 0, %v1089_v19  ;;  %v1394_v0 = vld [vmem:[%s3630_s24] sm:$0xff] }
 0x1b6   : > { %v1031_v41 = vsel %vm239_vm15, %v1028_v43, 0.0  ;;  %v1037_v24 = vpop.permute.xlu1 %1036  ;;  %v1030_v52 = vsel %vm238_vm6, %v1029_v38, 0.0 }
 0x1b7   : > { %v1033_v17 = vadd.f32 %v1031_v41, %v1023_v40  ;;  %v1032_v61 = vadd.f32 %v1030_v52, %v1022_v1 }
 0x1bb   : > { %v1035_v50 = vpop.permute.xlu0 %1034 }
 0x1bc   : > { %v1038_v56 = vsel %vm630_vm1, %v1035_v50, %v1037_v24  ;;  %v1039_v55 = vsel %vm630_vm1, %v1037_v24, %v1035_v50 }
 0x1bd   : > { %v1040_v11 = vsel %vm242_vm7, %v1039_v55, 0.0  ;;  %v1041_v45 = vsel %vm243_vm2, %v1038_v56, 0.0  ;;  %v1049_v42 = vpop.permute.xlu1 %1048 }
 0x1be   : > { %v1042_v12 = vadd.f32 %v1040_v11, %v1032_v61  ;;  %v1043_v4 = vadd.f32 %v1041_v45, %v1033_v17 }
 0x1c0   : > { %v1044_v47 = vadd.f32 %v1042_v12, %v2890_v2  ;;  %v1045_v16 = vadd.f32 %v1043_v4, %v2892_v29 }
 0x1c2   : > { %v1047_v6 = vpop.permute.xlu0 %1046 }
 0x1c3   : > { %v1051_v5 = vsel %vm643_vm3, %v1049_v42, %v1047_v6  ;;  %v1050_v58 = vsel %vm643_vm3, %v1047_v6, %v1049_v42 }
 0x1c4   : > { %v1053_v27 = vsel %vm3626_vm13, %v1051_v5, 0.0  ;;  %v1059_v34 = vpop.permute.xlu1 %1058  ;;  %v1052_v28 = vsel %vm246_vm12, %v1050_v58, 0.0 }
 0x1c5   : > { %v1055_v37 = vadd.f32 %v1053_v27, %v1045_v16  ;;  %v1054_v22 = vadd.f32 %v1052_v28, %v1044_v47 }
 0x1c8   : > { %v1057_v51 = vpop.permute.xlu0 %1056 }
 0x1c9   : > { %v1060_v2 = vsel %vm654_vm8, %v1057_v51, %v1059_v34  ;;  %v1061_v29 = vsel %vm654_vm8, %v1059_v34, %v1057_v51 }
 0x1ca   : > { %v1063_v7 = vsel %vm3627_vm14, %v1061_v29, 0.0  ;;  %v1062_v57 = vsel %vm250_vm9, %v1060_v2, 0.0 }
 0x1cb   : > { %v1065_v23 = vadd.f32 %v1063_v7, %v1055_v37  ;;  %v1069_v21 = vpop.permute.xlu1 %1068  ;;  %v1064_v20 = vadd.f32 %v1062_v57, %v1054_v22 }
 0x1ce   : > { %v1067_v26 = vpop.permute.xlu0 %1066 }
 0x1cf   : > { %v1070_v59 = vsel %vm665_vm10, %v1067_v26, %v1069_v21  ;;  %v1071_v62 = vsel %vm665_vm10, %v1069_v21, %v1067_v26 }
 0x1d0   : > { %v1072_v32 = vsel %vm254_vm4, %v1070_v59, 0.0  ;;  %v1073_v36 = vsel %vm255_vm11, %v1071_v62, 0.0 }
 0x1d1   : > { %v1074_v60 = vadd.f32 %v1072_v32, %v1064_v20  ;;  %v1075_v44 = vadd.f32 %v1073_v36, %v1065_v23 }
 0x1d3   : > { %v1307_v10 = vmul.f32 -1.442695, %v1074_v60  ;;  %v1308_v8 = vmul.f32 -1.442695, %v1075_v44 }
 0x1d5   : > { %1386 = vpow2.f32 %v1307_v10 }
 0x1d6   : > { %1388 = vpow2.f32 %v1308_v8 }
 0x1df   : > { %v1387_v63 = vpop.eup %1386 }
 0x1e0   : > { %v1389_v54 = vpop.eup %1388  ;;  %v1082_v53 = vadd.f32 1.0, %v1387_v63 }
 0x1e1   : > { %v1083_v31 = vadd.f32 1.0, %v1389_v54 }
 0x1e2   : > { %1390 = vrcp.f32 %v1082_v53 }
 0x1e3   : > { %1392 = vrcp.f32 %v1083_v31 }
 0x1ec   : > { %v1391_v48 = vpop.eup %1390 }
 0x1ed   : > { %v1393_v35 = vpop.eup %1392  ;;  %v1091_v30 = vrot.slane %v1391_v48, %v1090_v18 }
 0x1ee   : > { %v1095_v39 = vrot.slane %v1393_v35, %v1090_v18 }
 0x1f0   : > { %v1098_v3 = vcombine.low %v1091_v30, %v1095_v39 }
 0x1f2   : > { %v1100_v14 = vmul.f32 %v1394_v0, %v1098_v3 }
 0x1f4   : > { %1101 = vst [vmem:[%s171_s21] sm:$0xff] %v1100_v14 }
 0x1f5   : > { %1451 = shalt.err (!%p1448_p0)
}
 0x1f6   : > { %s1452_s30 = scalar_lea.hbm %s3042_s28, 128  ;;  %s1456_s4 = scalar_lea.hbm %s3634_s18, 256 }
 0x1f7   : > { %p1453_p3 = scmp.ne.s32.totalorder %s3042_s28, %s1452_s30  ;;  %p1457_p6 = scmp.lt.u32.totalorder %s3042_s28, %s3634_s18 }
 0x1f8   : > { %p1458_p13 = scmp.lt.u32.totalorder %s1456_s4, %s1452_s30  ;;  %p1460_p8 = scmp.lt.u32.totalorder %s1452_s30, %s3042_s28 }
 0x1f9   : > { %p1454_p7 = pnand %p1453_p3, %p3635_p9 }
 0x1fa   : > { %p1459_p4 = por %p1458_p13, %p1457_p6 }
 0x1fb   : > { %p1455_p10 = pneg %p1454_p7 }
 0x1fc   : > { %p1461_p11 = por %p1460_p8, %p1459_p4 }
 0x1fe   : > { %p1462_p5 = pnand %p1461_p11, %p1455_p10 }
 0x200   : > { %1465 = shalt.err (!%p1462_p5)
}
 0x201   : > { %1322 = dma.vmem_to_hbm [thread:$0]  (%p3635_p9), %s3044_s26, 128, %s3042_s28, %s1103_s12  }
 0x202 PF: > { %s3636_s22 = sld [smem:[#allocation11_spill]]  ;;  %s3637_s19 = sld [smem:[#allocation16_spill]] }
 0x203   : > { %s3638_s27 = sld [smem:[#allocation14_spill]] }
 0x208   : > { %s1129_s15 = sand.u32 1, %s3636_s22   ;;  %p3639_p1 = scmp.ne.s32.totalorder %s3637_s19, 0 }
 0x209   : > { %p3640_p2 = scmp.ge.s32.totalorder %s3638_s27, 2  ;;  %s1130_s25 = scalar_lea.sflag [#allocation4], %s1129_s15 }
 0x20b   : > { %p1333_p12 = pnand %p3640_p2, %p3639_p1 }
 0x20d   : > { %1491 = dma.done.wait (!%p1333_p12), %s1130_s25, 128  }
 0x20e   : > { %1493 = vsyncadd (!%p1333_p12), %s1130_s25, 4294967168  ;;  %s3641_s12 = sld [smem:[#allocation17_spill]]  ;;  %s3642_s9 = sld [smem:[#allocation12_spill]] }
 0x20f   : > { %s3643_s10 = sld [smem:[#allocation13_spill]]  ;;  %s3644_s11 = sld [smem:[#allocation18_spill]] }
 0x214   : > { %p16_p0 = scmp.ge.s32.totalorder %s3641_s12, 4  }
 0x216   :  { %18 = sbr.rel (!%p16_p0) target bundleno = 10 (0xa), region = 78 }
 0x21d   :  { %1135 = vsyncpa [#allocation3], 1 }
 0x21e   :  { %1137 = vsyncpa [#allocation3 + $0x1], 1 }
 0x21f   :  { %1138 = vsyncpa [#allocation4], 1 }
 0x220   :  { %1140 = vsyncpa [#allocation4 + $0x1], 1 }
 0x221   :  { %1141 = vsyncpa [#allocation5], 1 }
 0x222   :  { %1143 = vsyncpa [#allocation5 + $0x1], 1 }

</bundles_post_ra>
